<compile_context>
chip_gen: v5e
topology: v5e:2x2
jax: 0.10.0
libtpu: 0.0.40
codegen_flags: <defaults>
</compile_context>

<pallas_src>
import functools

import jax
import jax.numpy as jnp
from jax import lax
from jax.experimental import pallas as pl
from jax.experimental.pallas import tpu as pltpu


def _sentence_encoder_kernel(
    x_ref,        # (T, Bt, 2I)   time-major; [:, :, :I] = x[t], [:, :, I:] = x[T-1-t]
    wih_ref,      # (2I, 6Hp)     fused input weights, gate cols [r_f r_b z_f z_b n_f n_b]
    bih_ref,      # (1, 6Hp)      input bias with bhh_r / bhh_z folded in
    whh_ref,      # (2Hp, 6Hp)    block-diagonal over directions, gate-interleaved cols
    bhhn_ref,     # (1, 2Hp)      n-gate recurrent bias only
    w1_ref,       # (2Hp, 2Hp)    attention layer1 (stored (in, out))
    b1_ref,       # (1, 2Hp)
    w2_ref,       # (2Hp, 2Hp)    attention layer2 (no bias)
    sent_ref,     # out (Bt, 2Hp)
    lasth_ref,    # out (Bt, 2Hp)   [h_fwd_final | h_bwd_final]
    alpha_ref,    # out (T, Bt, 2Hp)  time-major (wrapper transposes / slices)
    xp_ref,       # VMEM (T, Bt, 6Hp)  fused input projections
    hs_ref,       # VMEM (T, Bt, 2Hp)  bidirectional GRU outputs (original time order)
):
    T, Bt, I2 = x_ref.shape
    Hp2 = hs_ref.shape[-1]          # 2*Hp (= 128 after padding)
    Hp = Hp2 // 2
    H6 = 3 * Hp2

    # ---- fused input projection: ONE MXU matmul for both directions, all timesteps.
    x2d = x_ref[...].reshape(T * Bt, I2)
    xp_ref[...] = (
        jnp.dot(x2d, wih_ref[...], preferred_element_type=jnp.float32) + bih_ref[...]
    ).reshape(T, Bt, H6)

    whh = whh_ref[...]              # hoisted out of the serial loop
    bhh_n = bhhn_ref[...]

    # ---- fused bidirectional GRU recurrence (PyTorch gate order r | z | n).
    # Carry h = [h_fwd | h_bwd]; forward uses time `step`, backward uses time T-1-step
    # (backward projections were already time-reversed when building x_cat).
    # All gate slices below are 128-lane (vreg) aligned after padding.
    def body(step, h):
        gx = xp_ref[step]                                               # (Bt, 6Hp)
        gh = jnp.dot(h, whh, preferred_element_type=jnp.float32)        # (Bt, 6Hp)
        r = jax.nn.sigmoid(gx[:, 0:Hp2] + gh[:, 0:Hp2])
        z = jax.nn.sigmoid(gx[:, Hp2:2 * Hp2] + gh[:, Hp2:2 * Hp2])
        n = jnp.tanh(gx[:, 2 * Hp2:3 * Hp2] + r * (gh[:, 2 * Hp2:3 * Hp2] + bhh_n))
        h_new = (1.0 - z) * n + z * h
        hs_ref[step, :, 0:Hp] = h_new[:, 0:Hp]             # fwd output at time step
        hs_ref[T - 1 - step, :, Hp:Hp2] = h_new[:, Hp:Hp2]  # bwd output at time T-1-step
        return h_new

    unroll = True if T <= 32 else 8
    h_last = lax.fori_loop(0, T, body, jnp.zeros((Bt, Hp2), jnp.float32),
                           unroll=unroll)

    lasth_ref[...] = h_last                                # one lane-dense store

    # ---- attention: u = tanh(hs @ W1 + b1); logits = u @ W2; softmax over time.
    hs = hs_ref[...]                                       # (T, Bt, 2Hp)
    hs2d = hs.reshape(T * Bt, Hp2)
    u = jnp.tanh(jnp.dot(hs2d, w1_ref[...], preferred_element_type=jnp.float32)
                 + b1_ref[...])
    logits = jnp.dot(u, w2_ref[...],
                     preferred_element_type=jnp.float32).reshape(T, Bt, Hp2)
    m = jnp.max(logits, axis=0, keepdims=True)
    e = jnp.exp(logits - m)
    denom = jnp.sum(e, axis=0, keepdims=True)
    # approx=True would be cheaper (EUP) but risks the 1e-4 parity; keep exact.
    alphas = e * pl.reciprocal(denom, approx=False)

    alpha_ref[...] = alphas
    sent_ref[...] = jnp.sum(alphas * hs, axis=0)           # (Bt, 2Hp)


def _pack_params(p, Hp):
    """Zero-pad H->Hp and fuse fwd/bwd GRU + attention weights.

    Returned layouts:
      w_ih (2I, 6Hp), b_ih (1, 6Hp)  gate cols [r_f r_b z_f z_b n_f n_b], each Hp wide,
                                      bhh_r / bhh_z folded into b_ih.
      w_hh (2Hp, 6Hp)                block-diagonal over directions.
      bhh_n (1, 2Hp)                 n-gate recurrent bias, [n_f | n_b].
      w1 (2Hp, 2Hp), b1 (1, 2Hp), w2 (2Hp, 2Hp)  attention, hs-lane layout on the
                                      hs-facing axes, end-padded on the u axis.
    """
    H = p["whh_f"].shape[0]
    f32 = jnp.float32

    def gate(w, g):
        # take gate g (H cols) and zero-pad to Hp cols
        rows = w.shape[0]
        return jnp.concatenate(
            [w[:, g * H:(g + 1) * H], jnp.zeros((rows, Hp - H), f32)], axis=-1)

    def fuse(wf, wb):
        # wf, wb: (rows, 3H), gate order r|z|n, (in, out) layout.
        # -> (2*rows, 6Hp): rows 0:rows drive fwd, rows rows:2rows drive bwd.
        rows = wf.shape[0]
        zp = jnp.zeros((rows, Hp), f32)
        top = jnp.concatenate([gate(wf, 0), zp, gate(wf, 1), zp, gate(wf, 2), zp], -1)
        bot = jnp.concatenate([zp, gate(wb, 0), zp, gate(wb, 1), zp, gate(wb, 2)], -1)
        return jnp.concatenate([top, bot], axis=0)

    def pad_rows(w):
        return jnp.concatenate(
            [w, jnp.zeros((Hp - w.shape[0], w.shape[1]), f32)], axis=0)

    w_ih = fuse(p["wih_f"], p["wih_b"])                             # (2I, 6Hp)
    w_hh = fuse(pad_rows(p["whh_f"]), pad_rows(p["whh_b"]))         # (2Hp, 6Hp)

    def gate_bias(bf, bb, g):
        pad = jnp.zeros((1, Hp - H), f32)
        return jnp.concatenate(
            [bf[:, g * H:(g + 1) * H], pad, bb[:, g * H:(g + 1) * H], pad], axis=-1)

    # fold bhh into bih for r and z gates (only the n gate needs bhh inside r*(...)).
    bif, bib = p["bih_f"] + p["bhh_f"], p["bih_b"] + p["bhh_b"]
    b_ih = jnp.concatenate([gate_bias(bif, bib, 0),
                            gate_bias(bif, bib, 1),
                            gate_bias(p["bih_f"], p["bih_b"], 2)], axis=-1)  # (1, 6Hp)
    bhh_n = gate_bias(p["bhh_f"], p["bhh_b"], 2)                             # (1, 2Hp)

    # ---- attention weights, padded to the hs lane layout [fwd H |0| bwd H |0].
    def pad_feat(a, axis):
        fwd, bwd = jnp.split(a, 2, axis=axis)
        pad_shape = list(a.shape)
        pad_shape[axis] = Hp - H
        pad = jnp.zeros(pad_shape, f32)
        return jnp.concatenate([fwd, pad, bwd, pad], axis=axis)

    H2, Hp2 = 2 * H, 2 * Hp
    w1 = pad_feat(p["w1"], axis=0)                                    # (2Hp, 2H)
    w1 = jnp.concatenate([w1, jnp.zeros((Hp2, Hp2 - H2), f32)], -1)   # (2Hp, 2Hp)
    b1 = jnp.concatenate([p["b1"], jnp.zeros((1, Hp2 - H2), f32)], -1)
    w2 = pad_feat(p["w2"], axis=1)                                    # (2H, 2Hp)
    w2 = jnp.concatenate([w2, jnp.zeros((Hp2 - H2, Hp2), f32)], 0)    # (2Hp, 2Hp)

    return w_ih, b_ih, w_hh, bhh_n, w1, b1, w2


def _num_tensorcores():
    """Best-effort TensorCore-per-chip count; defaults to 1 (safe on v5e/v6e)."""
    try:
        info = pltpu.get_tpu_info()
        for attr in ("num_cores", "core_count", "num_tensorcores",
                     "tensorcores_per_chip", "num_cores_per_chip"):
            n = getattr(info, attr, None)
            if isinstance(n, int) and n >= 1:
                return n
    except Exception:
        pass
    try:
        kind = jax.devices()[0].device_kind.lower()
        if "v7" in kind or "7x" in kind:
            return 2
    except Exception:
        pass
    return 1


def _default_batch_tile(B):
    # Split the batch over the grid ONLY when there is >1 TensorCore (v7x); on
    # single-TC chips the grid is a sequential loop and splitting just doubles the
    # serial recurrence length.  Tile must stay 8-sublane aligned.
    if _num_tensorcores() >= 2 and B % 2 == 0 and (B // 2) % 8 == 0:
        return B // 2
    return B


@functools.partial(jax.jit, static_argnames=("batch_tile",))
def _sentence_encoder_impl(x, params, batch_tile):
    B, T, I = x.shape
    H = params["whh_f"].shape[0]
    Hp = ((H + 63) // 64) * 64            # 2*Hp is a multiple of 128 lanes
    Bt = batch_tile
    assert B % Bt == 0, "batch_tile must divide B"
    assert Bt == B or Bt % 8 == 0, "batch_tile must be 8-aligned"
    nb = B // Bt

    # ---- wrapper-side layout work (fused into surrounding XLA graph, not the kernel)
    x_tm = jnp.swapaxes(x, 0, 1)                              # (T, B, I)  time-major
    x_cat = jnp.concatenate([x_tm, x_tm[::-1]], axis=-1)      # (T, B, 2I)
    w_ih, b_ih, w_hh, bhh_n, w1, b1, w2 = _pack_params(params, Hp)

    out_shapes = (
        jax.ShapeDtypeStruct((B, 2 * Hp), jnp.float32),       # sentence vector (padded)
        jax.ShapeDtypeStruct((B, 2 * Hp), jnp.float32),       # last hidden (padded)
        jax.ShapeDtypeStruct((T, B, 2 * Hp), jnp.float32),    # alphas, time-major (padded)
    )

    const2d = lambda b: (0, 0)
    in_specs = [
        pl.BlockSpec((T, Bt, 2 * I), lambda b: (0, b, 0)),    # x_cat, tiled over batch
        pl.BlockSpec((2 * I, 6 * Hp), const2d),               # weights: resident blocks
        pl.BlockSpec((1, 6 * Hp), const2d),
        pl.BlockSpec((2 * Hp, 6 * Hp), const2d),
        pl.BlockSpec((1, 2 * Hp), const2d),
        pl.BlockSpec((2 * Hp, 2 * Hp), const2d),
        pl.BlockSpec((1, 2 * Hp), const2d),
        pl.BlockSpec((2 * Hp, 2 * Hp), const2d),
    ]
    out_specs = [
        pl.BlockSpec((Bt, 2 * Hp), lambda b: (b, 0)),
        pl.BlockSpec((Bt, 2 * Hp), lambda b: (b, 0)),
        pl.BlockSpec((T, Bt, 2 * Hp), lambda b: (0, b, 0)),
    ]

    sent_p, lasth_p, alphas_p = pl.pallas_call(
        _sentence_encoder_kernel,
        out_shape=out_shapes,
        grid=(nb,),
        in_specs=in_specs,
        out_specs=out_specs,
        scratch_shapes=[
            pltpu.VMEM((T, Bt, 6 * Hp), jnp.float32),   # fused input projections
            pltpu.VMEM((T, Bt, 2 * Hp), jnp.float32),   # bidirectional GRU outputs
        ],
        compiler_params=pltpu.CompilerParams(
            dimension_semantics=("parallel",)),
    )(x_cat, w_ih, b_ih, w_hh, bhh_n, w1, b1, w2)

    # ---- slice the real H features back out of the padded lane layout.
    def unpad_feat(a):
        return jnp.concatenate([a[..., :H], a[..., Hp:Hp + H]], axis=-1)

    sent = unpad_feat(sent_p)                                  # (B, 2H)
    lasth = jnp.stack([lasth_p[:, :H], lasth_p[:, Hp:Hp + H]], axis=0)   # (2, B, H)
    alphas = jnp.swapaxes(unpad_feat(alphas_p), 0, 1)          # (B, T, 2H)

    return sent[None, :, :], [lasth, alphas]


def sentence_encoder_forward(x, params, batch_tile=None):
    """x: (B, T, I) float32.

    Returns (output_attention (1,B,2H), [last_hidden (2,B,H), att_weights (B,T,2H)]).
    """
    if batch_tile is None:
        batch_tile = _default_batch_tile(x.shape[0])
    return _sentence_encoder_impl(x, params, batch_tile)


def reference_forward(x, p):
    """Pure-JAX reference mirroring the PyTorch forward exactly."""
    B, T, I = x.shape
    H = p["whh_f"].shape[0]

    def gru_dir(wih, whh, bih, bhh, reverse):
        h = jnp.zeros((B, H), jnp.float32)
        outs = [None] * T
        ts = range(T - 1, -1, -1) if reverse else range(T)
        for t in ts:
            gx = x[:, t, :] @ wih + bih
            gh = h @ whh + bhh
            r = jax.nn.sigmoid(gx[:, :H] + gh[:, :H])
            z = jax.nn.sigmoid(gx[:, H:2 * H] + gh[:, H:2 * H])
            n = jnp.tanh(gx[:, 2 * H:] + r * gh[:, 2 * H:])
            h = (1.0 - z) * n + z * h
            outs[t] = h
        return jnp.stack(outs, axis=1), h

    of, hf = gru_dir(p["wih_f"], p["whh_f"], p["bih_f"], p["bhh_f"], False)
    ob, hb = gru_dir(p["wih_b"], p["whh_b"], p["bih_b"], p["bhh_b"], True)
    hs = jnp.concatenate([of, ob], axis=-1)                           # (B, T, 2H)
    u = jnp.tanh(hs @ p["w1"] + p["b1"])
    logits = u @ p["w2"]
    alphas = jax.nn.softmax(logits, axis=1)
    sent = jnp.sum(alphas * hs, axis=1)
    return sent[None], [jnp.stack([hf, hb], axis=0), alphas]


if __name__ == "__main__":
    key = jax.random.PRNGKey(0)
    T, I, H = 8, 32, 32              # sentences-per-doc, word_hidden_size, hidden_size

    keys = jax.random.split(key, 13)

    def init(k, shape, scale):
        return jax.random.uniform(k, shape, jnp.float32, -scale, scale)

    sg = float(1.0 / jnp.sqrt(H))        # GRU init scale (matches PyTorch uniform bound)
    sa = float(1.0 / jnp.sqrt(2 * H))    # Linear init scale
    # Weights stored in (in, out) layout, i.e. transposed vs. PyTorch's (out, in);
    # GRU gate order along the 3H axis is PyTorch's r | z | n.
    params = {
        "wih_f": init(keys[0], (I, 3 * H), sg), "whh_f": init(keys[1], (H, 3 * H), sg),
        "bih_f": init(keys[2], (1, 3 * H), sg), "bhh_f": init(keys[3], (1, 3 * H), sg),
        "wih_b": init(keys[4], (I, 3 * H), sg), "whh_b": init(keys[5], (H, 3 * H), sg),
        "bih_b": init(keys[6], (1, 3 * H), sg), "bhh_b": init(keys[7], (1, 3 * H), sg),
        "w1": init(keys[8], (2 * H, 2 * H), sa),
        "b1": init(keys[9], (1, 2 * H), sa),
        "w2": init(keys[10], (2 * H, 2 * H), sa),
    }

    # --- small shape (B=2): single full-batch block ---
    x_small = jax.random.normal(keys[11], (2, T, I), jnp.float32)
    out, (lasth, alphas) = sentence_encoder_forward(x_small, params)
    jax.block_until_ready((out, lasth, alphas))

    ref_out, (ref_h, ref_a) = reference_forward(x_small, params)
    assert jnp.allclose(out, ref_out, atol=1e-4, rtol=1e-4)
    assert jnp.allclose(lasth, ref_h, atol=1e-4, rtol=1e-4)
    assert jnp.allclose(alphas, ref_a, atol=1e-4, rtol=1e-4)

    # --- larger batch (B=16), default (generation-aware) tiling ---
    x_big = jax.random.normal(keys[12], (16, T, I), jnp.float32)
    out_b, (lasth_b, alphas_b) = sentence_encoder_forward(x_big, params)
    jax.block_until_ready((out_b, lasth_b, alphas_b))

    ref_out_b, (ref_h_b, ref_a_b) = reference_forward(x_big, params)
    assert jnp.allclose(out_b, ref_out_b, atol=1e-4, rtol=1e-4)
    assert jnp.allclose(lasth_b, ref_h_b, atol=1e-4, rtol=1e-4)
    assert jnp.allclose(alphas_b, ref_a_b, atol=1e-4, rtol=1e-4)

    # --- explicit batch-tiled grid (exercises the nb=2 / per-core path on any chip) ---
    out_t, (lasth_t, alphas_t) = sentence_encoder_forward(x_big, params, batch_tile=8)
    jax.block_until_ready((out_t, lasth_t, alphas_t))
    assert jnp.allclose(out_t, ref_out_b, atol=1e-4, rtol=1e-4)
    assert jnp.allclose(lasth_t, ref_h_b, atol=1e-4, rtol=1e-4)
    assert jnp.allclose(alphas_t, ref_a_b, atol=1e-4, rtol=1e-4)

    print("KERNEL_OK")
</pallas_src>

<mosaic_0001>
module attributes {stable_mosaic.version = 11 : i64} {
  func.func @_sentence_encoder_kernel(%arg0: i32, %arg1: memref<8x2x64xf32, #tpu.memory_space<vmem>>, %arg2: memref<64x384xf32, #tpu.memory_space<vmem>>, %arg3: memref<1x384xf32, #tpu.memory_space<vmem>>, %arg4: memref<128x384xf32, #tpu.memory_space<vmem>>, %arg5: memref<1x128xf32, #tpu.memory_space<vmem>>, %arg6: memref<128x128xf32, #tpu.memory_space<vmem>>, %arg7: memref<1x128xf32, #tpu.memory_space<vmem>>, %arg8: memref<128x128xf32, #tpu.memory_space<vmem>>, %arg9: memref<2x128xf32, #tpu.memory_space<vmem>>, %arg10: memref<2x128xf32, #tpu.memory_space<vmem>>, %arg11: memref<8x2x128xf32, #tpu.memory_space<vmem>>, %arg12: memref<8x2x384xf32, #tpu.memory_space<vmem>>, %arg13: memref<8x2x128xf32, #tpu.memory_space<vmem>>) attributes {dimension_semantics = [#tpu.dimension_semantics<parallel>], iteration_bounds = array<i64: 1>, scalar_prefetch = 0 : i64, scratch_operands = 2 : i64, tpu.core_type = #tpu.core_type<tc>, window_params = [{transform_indices = @transform_0, window_bounds = array<i64: 8, 2, 64>}, {pipeline_mode = #tpu.pipeline_mode<synchronous>, transform_indices = @transform_1, window_bounds = array<i64: 64, 384>}, {pipeline_mode = #tpu.pipeline_mode<synchronous>, transform_indices = @transform_2, window_bounds = array<i64: 1, 384>}, {pipeline_mode = #tpu.pipeline_mode<synchronous>, transform_indices = @transform_3, window_bounds = array<i64: 128, 384>}, {pipeline_mode = #tpu.pipeline_mode<synchronous>, transform_indices = @transform_4, window_bounds = array<i64: 1, 128>}, {pipeline_mode = #tpu.pipeline_mode<synchronous>, transform_indices = @transform_5, window_bounds = array<i64: 128, 128>}, {pipeline_mode = #tpu.pipeline_mode<synchronous>, transform_indices = @transform_6, window_bounds = array<i64: 1, 128>}, {pipeline_mode = #tpu.pipeline_mode<synchronous>, transform_indices = @transform_7, window_bounds = array<i64: 128, 128>}, {transform_indices = @transform_8, window_bounds = array<i64: 2, 128>}, {transform_indices = @transform_9, window_bounds = array<i64: 2, 128>}, {transform_indices = @transform_10, window_bounds = array<i64: 8, 2, 128>}]} {
    %c0 = arith.constant 0 : index
    %c0_0 = arith.constant 0 : index
    %c0_1 = arith.constant 0 : index
    %0 = vector.load %arg1[%c0, %c0_0, %c0_1] : memref<8x2x64xf32, #tpu.memory_space<vmem>>, vector<8x2x64xf32>
    %1 = vector.shape_cast %0 : vector<8x2x64xf32> to vector<16x64xf32>
    %c0_2 = arith.constant 0 : index
    %c0_3 = arith.constant 0 : index
    %2 = vector.load %arg2[%c0_2, %c0_3] : memref<64x384xf32, #tpu.memory_space<vmem>>, vector<64x384xf32>
    %cst = arith.constant dense<0.000000e+00> : vector<16x384xf32>
    %3 = tpu.matmul %1, %2, %cst {dimension_numbers = #tpu.dot_dimension_numbers<[1], [0], [0], [1], [0, 0, 1, 1], [], []>} : vector<16x64xf32>, vector<64x384xf32>, vector<16x384xf32> -> vector<16x384xf32>
    %c0_4 = arith.constant 0 : index
    %c0_5 = arith.constant 0 : index
    %4 = vector.load %arg3[%c0_4, %c0_5] : memref<1x384xf32, #tpu.memory_space<vmem>>, vector<1x384xf32>
    %5 = vector.broadcast %4 : vector<1x384xf32> to vector<16x384xf32>
    %6 = arith.addf %3, %5 : vector<16x384xf32>
    %7 = vector.shape_cast %6 : vector<16x384xf32> to vector<8x2x384xf32>
    %c0_6 = arith.constant 0 : index
    %c0_7 = arith.constant 0 : index
    %c0_8 = arith.constant 0 : index
    %8 = vector.load %arg12[%c0_6, %c0_7, %c0_8] : memref<8x2x384xf32, #tpu.memory_space<vmem>>, vector<8x2x384xf32>
    tpu.vector_store %arg12[%c0_6, %c0_7, %c0_8], %7 {strides = array<i32>} : memref<8x2x384xf32, #tpu.memory_space<vmem>>, vector<8x2x384xf32>,
    %c0_9 = arith.constant 0 : index
    %c0_10 = arith.constant 0 : index
    %9 = vector.load %arg4[%c0_9, %c0_10] : memref<128x384xf32, #tpu.memory_space<vmem>>, vector<128x384xf32>
    %c0_11 = arith.constant 0 : index
    %c0_12 = arith.constant 0 : index
    %10 = vector.load %arg5[%c0_11, %c0_12] : memref<1x128xf32, #tpu.memory_space<vmem>>, vector<1x128xf32>
    %cst_13 = arith.constant 0.000000e+00 : f32
    %11 = vector.broadcast %cst_13 : f32 to vector<2x128xf32>
    %c0_i32 = arith.constant 0 : i32
    %12 = arith.index_cast %c0_i32 : i32 to index
    %c0_14 = arith.constant 0 : index
    %c0_15 = arith.constant 0 : index
    %13 = vector.load %arg12[%12, %c0_14, %c0_15] : memref<8x2x384xf32, #tpu.memory_space<vmem>>, vector<1x2x384xf32>
    %14 = vector.shape_cast %13 : vector<1x2x384xf32> to vector<2x384xf32>
    %cst_16 = arith.constant dense<0.000000e+00> : vector<2x384xf32>
    %15 = tpu.matmul %11, %9, %cst_16 {dimension_numbers = #tpu.dot_dimension_numbers<[1], [0], [0], [1], [0, 0, 1, 1], [], []>} : vector<2x128xf32>, vector<128x384xf32>, vector<2x384xf32> -> vector<2x384xf32>
    %16 = vector.extract_strided_slice %14 {offsets = [0, 0], sizes = [2, 128], strides = [1, 1]} : vector<2x384xf32> to vector<2x128xf32>
    %17 = vector.extract_strided_slice %15 {offsets = [0, 0], sizes = [2, 128], strides = [1, 1]} : vector<2x384xf32> to vector<2x128xf32>
    %18 = arith.addf %16, %17 : vector<2x128xf32>
    %19 = arith.negf %18 : vector<2x128xf32>
    %20 = math.exp %19 : vector<2x128xf32>
    %cst_17 = arith.constant 1.000000e+00 : f32
    %21 = vector.broadcast %cst_17 : f32 to vector<2x128xf32>
    %22 = arith.addf %21, %20 : vector<2x128xf32>
    %23 = arith.divf %21, %22 : vector<2x128xf32>
    %24 = vector.extract_strided_slice %14 {offsets = [0, 128], sizes = [2, 128], strides = [1, 1]} : vector<2x384xf32> to vector<2x128xf32>
    %25 = vector.extract_strided_slice %15 {offsets = [0, 128], sizes = [2, 128], strides = [1, 1]} : vector<2x384xf32> to vector<2x128xf32>
    %26 = arith.addf %24, %25 : vector<2x128xf32>
    %27 = arith.negf %26 : vector<2x128xf32>
    %28 = math.exp %27 : vector<2x128xf32>
    %cst_18 = arith.constant 1.000000e+00 : f32
    %29 = vector.broadcast %cst_18 : f32 to vector<2x128xf32>
    %30 = arith.addf %29, %28 : vector<2x128xf32>
    %31 = arith.divf %29, %30 : vector<2x128xf32>
    %32 = vector.extract_strided_slice %14 {offsets = [0, 256], sizes = [2, 128], strides = [1, 1]} : vector<2x384xf32> to vector<2x128xf32>
    %33 = vector.extract_strided_slice %15 {offsets = [0, 256], sizes = [2, 128], strides = [1, 1]} : vector<2x384xf32> to vector<2x128xf32>
    %34 = vector.broadcast %10 : vector<1x128xf32> to vector<2x128xf32>
    %35 = arith.addf %33, %34 : vector<2x128xf32>
    %36 = arith.mulf %23, %35 : vector<2x128xf32>
    %37 = arith.addf %32, %36 : vector<2x128xf32>
    %38 = math.tanh %37 : vector<2x128xf32>
    %cst_19 = arith.constant 1.000000e+00 : f32
    %39 = vector.broadcast %cst_19 : f32 to vector<2x128xf32>
    %40 = arith.subf %39, %31 : vector<2x128xf32>
    %41 = arith.mulf %40, %38 : vector<2x128xf32>
    %42 = arith.mulf %31, %11 : vector<2x128xf32>
    %43 = arith.addf %41, %42 : vector<2x128xf32>
    %44 = vector.extract_strided_slice %43 {offsets = [0, 0], sizes = [2, 64], strides = [1, 1]} : vector<2x128xf32> to vector<2x64xf32>
    %45 = arith.index_cast %c0_i32 : i32 to index
    %c0_20 = arith.constant 0 : index
    %c0_21 = arith.constant 0 : index
    %46 = vector.load %arg13[%45, %c0_20, %c0_21] : memref<8x2x128xf32, #tpu.memory_space<vmem>>, vector<1x2x64xf32>
    %47 = vector.shape_cast %46 : vector<1x2x64xf32> to vector<2x64xf32>
    %48 = vector.shape_cast %44 : vector<2x64xf32> to vector<1x2x64xf32>
    tpu.vector_store %arg13[%45, %c0_20, %c0_21], %48 {strides = array<i32>} : memref<8x2x128xf32, #tpu.memory_space<vmem>>, vector<1x2x64xf32>,
    %49 = vector.extract_strided_slice %43 {offsets = [0, 64], sizes = [2, 64], strides = [1, 1]} : vector<2x128xf32> to vector<2x64xf32>
    %c7_i32 = arith.constant 7 : i32
    %50 = arith.subi %c7_i32, %c0_i32 : i32
    %51 = arith.index_cast %50 : i32 to index
    %c0_22 = arith.constant 0 : index
    %c64 = arith.constant 64 : index
    %52 = vector.load %arg13[%51, %c0_22, %c64] : memref<8x2x128xf32, #tpu.memory_space<vmem>>, vector<1x2x64xf32>
    %53 = vector.shape_cast %52 : vector<1x2x64xf32> to vector<2x64xf32>
    %54 = vector.shape_cast %49 : vector<2x64xf32> to vector<1x2x64xf32>
    tpu.vector_store %arg13[%51, %c0_22, %c64], %54 {strides = array<i32>} : memref<8x2x128xf32, #tpu.memory_space<vmem>>, vector<1x2x64xf32>,
    %c1_i32 = arith.constant 1 : i32
    %55 = arith.index_cast %c1_i32 : i32 to index
    %c0_23 = arith.constant 0 : index
    %c0_24 = arith.constant 0 : index
    %56 = vector.load %arg12[%55, %c0_23, %c0_24] : memref<8x2x384xf32, #tpu.memory_space<vmem>>, vector<1x2x384xf32>
    %57 = vector.shape_cast %56 : vector<1x2x384xf32> to vector<2x384xf32>
    %cst_25 = arith.constant dense<0.000000e+00> : vector<2x384xf32>
    %58 = tpu.matmul %43, %9, %cst_25 {dimension_numbers = #tpu.dot_dimension_numbers<[1], [0], [0], [1], [0, 0, 1, 1], [], []>} : vector<2x128xf32>, vector<128x384xf32>, vector<2x384xf32> -> vector<2x384xf32>
    %59 = vector.extract_strided_slice %57 {offsets = [0, 0], sizes = [2, 128], strides = [1, 1]} : vector<2x384xf32> to vector<2x128xf32>
    %60 = vector.extract_strided_slice %58 {offsets = [0, 0], sizes = [2, 128], strides = [1, 1]} : vector<2x384xf32> to vector<2x128xf32>
    %61 = arith.addf %59, %60 : vector<2x128xf32>
    %62 = arith.negf %61 : vector<2x128xf32>
    %63 = math.exp %62 : vector<2x128xf32>
    %cst_26 = arith.constant 1.000000e+00 : f32
    %64 = vector.broadcast %cst_26 : f32 to vector<2x128xf32>
    %65 = arith.addf %64, %63 : vector<2x128xf32>
    %66 = arith.divf %64, %65 : vector<2x128xf32>
    %67 = vector.extract_strided_slice %57 {offsets = [0, 128], sizes = [2, 128], strides = [1, 1]} : vector<2x384xf32> to vector<2x128xf32>
    %68 = vector.extract_strided_slice %58 {offsets = [0, 128], sizes = [2, 128], strides = [1, 1]} : vector<2x384xf32> to vector<2x128xf32>
    %69 = arith.addf %67, %68 : vector<2x128xf32>
    %70 = arith.negf %69 : vector<2x128xf32>
    %71 = math.exp %70 : vector<2x128xf32>
    %cst_27 = arith.constant 1.000000e+00 : f32
    %72 = vector.broadcast %cst_27 : f32 to vector<2x128xf32>
    %73 = arith.addf %72, %71 : vector<2x128xf32>
    %74 = arith.divf %72, %73 : vector<2x128xf32>
    %75 = vector.extract_strided_slice %57 {offsets = [0, 256], sizes = [2, 128], strides = [1, 1]} : vector<2x384xf32> to vector<2x128xf32>
    %76 = vector.extract_strided_slice %58 {offsets = [0, 256], sizes = [2, 128], strides = [1, 1]} : vector<2x384xf32> to vector<2x128xf32>
    %77 = vector.broadcast %10 : vector<1x128xf32> to vector<2x128xf32>
    %78 = arith.addf %76, %77 : vector<2x128xf32>
    %79 = arith.mulf %66, %78 : vector<2x128xf32>
    %80 = arith.addf %75, %79 : vector<2x128xf32>
    %81 = math.tanh %80 : vector<2x128xf32>
    %cst_28 = arith.constant 1.000000e+00 : f32
    %82 = vector.broadcast %cst_28 : f32 to vector<2x128xf32>
    %83 = arith.subf %82, %74 : vector<2x128xf32>
    %84 = arith.mulf %83, %81 : vector<2x128xf32>
    %85 = arith.mulf %74, %43 : vector<2x128xf32>
    %86 = arith.addf %84, %85 : vector<2x128xf32>
    %87 = vector.extract_strided_slice %86 {offsets = [0, 0], sizes = [2, 64], strides = [1, 1]} : vector<2x128xf32> to vector<2x64xf32>
    %88 = arith.index_cast %c1_i32 : i32 to index
    %c0_29 = arith.constant 0 : index
    %c0_30 = arith.constant 0 : index
    %89 = vector.load %arg13[%88, %c0_29, %c0_30] : memref<8x2x128xf32, #tpu.memory_space<vmem>>, vector<1x2x64xf32>
    %90 = vector.shape_cast %89 : vector<1x2x64xf32> to vector<2x64xf32>
    %91 = vector.shape_cast %87 : vector<2x64xf32> to vector<1x2x64xf32>
    tpu.vector_store %arg13[%88, %c0_29, %c0_30], %91 {strides = array<i32>} : memref<8x2x128xf32, #tpu.memory_space<vmem>>, vector<1x2x64xf32>,
    %92 = vector.extract_strided_slice %86 {offsets = [0, 64], sizes = [2, 64], strides = [1, 1]} : vector<2x128xf32> to vector<2x64xf32>
    %c7_i32_31 = arith.constant 7 : i32
    %93 = arith.subi %c7_i32_31, %c1_i32 : i32
    %94 = arith.index_cast %93 : i32 to index
    %c0_32 = arith.constant 0 : index
    %c64_33 = arith.constant 64 : index
    %95 = vector.load %arg13[%94, %c0_32, %c64_33] : memref<8x2x128xf32, #tpu.memory_space<vmem>>, vector<1x2x64xf32>
    %96 = vector.shape_cast %95 : vector<1x2x64xf32> to vector<2x64xf32>
    %97 = vector.shape_cast %92 : vector<2x64xf32> to vector<1x2x64xf32>
    tpu.vector_store %arg13[%94, %c0_32, %c64_33], %97 {strides = array<i32>} : memref<8x2x128xf32, #tpu.memory_space<vmem>>, vector<1x2x64xf32>,
    %c2_i32 = arith.constant 2 : i32
    %98 = arith.index_cast %c2_i32 : i32 to index
    %c0_34 = arith.constant 0 : index
    %c0_35 = arith.constant 0 : index
    %99 = vector.load %arg12[%98, %c0_34, %c0_35] : memref<8x2x384xf32, #tpu.memory_space<vmem>>, vector<1x2x384xf32>
    %100 = vector.shape_cast %99 : vector<1x2x384xf32> to vector<2x384xf32>
    %cst_36 = arith.constant dense<0.000000e+00> : vector<2x384xf32>
    %101 = tpu.matmul %86, %9, %cst_36 {dimension_numbers = #tpu.dot_dimension_numbers<[1], [0], [0], [1], [0, 0, 1, 1], [], []>} : vector<2x128xf32>, vector<128x384xf32>, vector<2x384xf32> -> vector<2x384xf32>
    %102 = vector.extract_strided_slice %100 {offsets = [0, 0], sizes = [2, 128], strides = [1, 1]} : vector<2x384xf32> to vector<2x128xf32>
    %103 = vector.extract_strided_slice %101 {offsets = [0, 0], sizes = [2, 128], strides = [1, 1]} : vector<2x384xf32> to vector<2x128xf32>
    %104 = arith.addf %102, %103 : vector<2x128xf32>
    %105 = arith.negf %104 : vector<2x128xf32>
    %106 = math.exp %105 : vector<2x128xf32>
    %cst_37 = arith.constant 1.000000e+00 : f32
    %107 = vector.broadcast %cst_37 : f32 to vector<2x128xf32>
    %108 = arith.addf %107, %106 : vector<2x128xf32>
    %109 = arith.divf %107, %108 : vector<2x128xf32>
    %110 = vector.extract_strided_slice %100 {offsets = [0, 128], sizes = [2, 128], strides = [1, 1]} : vector<2x384xf32> to vector<2x128xf32>
    %111 = vector.extract_strided_slice %101 {offsets = [0, 128], sizes = [2, 128], strides = [1, 1]} : vector<2x384xf32> to vector<2x128xf32>
    %112 = arith.addf %110, %111 : vector<2x128xf32>
    %113 = arith.negf %112 : vector<2x128xf32>
    %114 = math.exp %113 : vector<2x128xf32>
    %cst_38 = arith.constant 1.000000e+00 : f32
    %115 = vector.broadcast %cst_38 : f32 to vector<2x128xf32>
    %116 = arith.addf %115, %114 : vector<2x128xf32>
    %117 = arith.divf %115, %116 : vector<2x128xf32>
    %118 = vector.extract_strided_slice %100 {offsets = [0, 256], sizes = [2, 128], strides = [1, 1]} : vector<2x384xf32> to vector<2x128xf32>
    %119 = vector.extract_strided_slice %101 {offsets = [0, 256], sizes = [2, 128], strides = [1, 1]} : vector<2x384xf32> to vector<2x128xf32>
    %120 = vector.broadcast %10 : vector<1x128xf32> to vector<2x128xf32>
    %121 = arith.addf %119, %120 : vector<2x128xf32>
    %122 = arith.mulf %109, %121 : vector<2x128xf32>
    %123 = arith.addf %118, %122 : vector<2x128xf32>
    %124 = math.tanh %123 : vector<2x128xf32>
    %cst_39 = arith.constant 1.000000e+00 : f32
    %125 = vector.broadcast %cst_39 : f32 to vector<2x128xf32>
    %126 = arith.subf %125, %117 : vector<2x128xf32>
    %127 = arith.mulf %126, %124 : vector<2x128xf32>
    %128 = arith.mulf %117, %86 : vector<2x128xf32>
    %129 = arith.addf %127, %128 : vector<2x128xf32>
    %130 = vector.extract_strided_slice %129 {offsets = [0, 0], sizes = [2, 64], strides = [1, 1]} : vector<2x128xf32> to vector<2x64xf32>
    %131 = arith.index_cast %c2_i32 : i32 to index
    %c0_40 = arith.constant 0 : index
    %c0_41 = arith.constant 0 : index
    %132 = vector.load %arg13[%131, %c0_40, %c0_41] : memref<8x2x128xf32, #tpu.memory_space<vmem>>, vector<1x2x64xf32>
    %133 = vector.shape_cast %132 : vector<1x2x64xf32> to vector<2x64xf32>
    %134 = vector.shape_cast %130 : vector<2x64xf32> to vector<1x2x64xf32>
    tpu.vector_store %arg13[%131, %c0_40, %c0_41], %134 {strides = array<i32>} : memref<8x2x128xf32, #tpu.memory_space<vmem>>, vector<1x2x64xf32>,
    %135 = vector.extract_strided_slice %129 {offsets = [0, 64], sizes = [2, 64], strides = [1, 1]} : vector<2x128xf32> to vector<2x64xf32>
    %c7_i32_42 = arith.constant 7 : i32
    %136 = arith.subi %c7_i32_42, %c2_i32 : i32
    %137 = arith.index_cast %136 : i32 to index
    %c0_43 = arith.constant 0 : index
    %c64_44 = arith.constant 64 : index
    %138 = vector.load %arg13[%137, %c0_43, %c64_44] : memref<8x2x128xf32, #tpu.memory_space<vmem>>, vector<1x2x64xf32>
    %139 = vector.shape_cast %138 : vector<1x2x64xf32> to vector<2x64xf32>
    %140 = vector.shape_cast %135 : vector<2x64xf32> to vector<1x2x64xf32>
    tpu.vector_store %arg13[%137, %c0_43, %c64_44], %140 {strides = array<i32>} : memref<8x2x128xf32, #tpu.memory_space<vmem>>, vector<1x2x64xf32>,
    %c3_i32 = arith.constant 3 : i32
    %141 = arith.index_cast %c3_i32 : i32 to index
    %c0_45 = arith.constant 0 : index
    %c0_46 = arith.constant 0 : index
    %142 = vector.load %arg12[%141, %c0_45, %c0_46] : memref<8x2x384xf32, #tpu.memory_space<vmem>>, vector<1x2x384xf32>
    %143 = vector.shape_cast %142 : vector<1x2x384xf32> to vector<2x384xf32>
    %cst_47 = arith.constant dense<0.000000e+00> : vector<2x384xf32>
    %144 = tpu.matmul %129, %9, %cst_47 {dimension_numbers = #tpu.dot_dimension_numbers<[1], [0], [0], [1], [0, 0, 1, 1], [], []>} : vector<2x128xf32>, vector<128x384xf32>, vector<2x384xf32> -> vector<2x384xf32>
    %145 = vector.extract_strided_slice %143 {offsets = [0, 0], sizes = [2, 128], strides = [1, 1]} : vector<2x384xf32> to vector<2x128xf32>
    %146 = vector.extract_strided_slice %144 {offsets = [0, 0], sizes = [2, 128], strides = [1, 1]} : vector<2x384xf32> to vector<2x128xf32>
    %147 = arith.addf %145, %146 : vector<2x128xf32>
    %148 = arith.negf %147 : vector<2x128xf32>
    %149 = math.exp %148 : vector<2x128xf32>
    %cst_48 = arith.constant 1.000000e+00 : f32
    %150 = vector.broadcast %cst_48 : f32 to vector<2x128xf32>
    %151 = arith.addf %150, %149 : vector<2x128xf32>
    %152 = arith.divf %150, %151 : vector<2x128xf32>
    %153 = vector.extract_strided_slice %143 {offsets = [0, 128], sizes = [2, 128], strides = [1, 1]} : vector<2x384xf32> to vector<2x128xf32>
    %154 = vector.extract_strided_slice %144 {offsets = [0, 128], sizes = [2, 128], strides = [1, 1]} : vector<2x384xf32> to vector<2x128xf32>
    %155 = arith.addf %153, %154 : vector<2x128xf32>
    %156 = arith.negf %155 : vector<2x128xf32>
    %157 = math.exp %156 : vector<2x128xf32>
    %cst_49 = arith.constant 1.000000e+00 : f32
    %158 = vector.broadcast %cst_49 : f32 to vector<2x128xf32>
    %159 = arith.addf %158, %157 : vector<2x128xf32>
    %160 = arith.divf %158, %159 : vector<2x128xf32>
    %161 = vector.extract_strided_slice %143 {offsets = [0, 256], sizes = [2, 128], strides = [1, 1]} : vector<2x384xf32> to vector<2x128xf32>
    %162 = vector.extract_strided_slice %144 {offsets = [0, 256], sizes = [2, 128], strides = [1, 1]} : vector<2x384xf32> to vector<2x128xf32>
    %163 = vector.broadcast %10 : vector<1x128xf32> to vector<2x128xf32>
    %164 = arith.addf %162, %163 : vector<2x128xf32>
    %165 = arith.mulf %152, %164 : vector<2x128xf32>
    %166 = arith.addf %161, %165 : vector<2x128xf32>
    %167 = math.tanh %166 : vector<2x128xf32>
    %cst_50 = arith.constant 1.000000e+00 : f32
    %168 = vector.broadcast %cst_50 : f32 to vector<2x128xf32>
    %169 = arith.subf %168, %160 : vector<2x128xf32>
    %170 = arith.mulf %169, %167 : vector<2x128xf32>
    %171 = arith.mulf %160, %129 : vector<2x128xf32>
    %172 = arith.addf %170, %171 : vector<2x128xf32>
    %173 = vector.extract_strided_slice %172 {offsets = [0, 0], sizes = [2, 64], strides = [1, 1]} : vector<2x128xf32> to vector<2x64xf32>
    %174 = arith.index_cast %c3_i32 : i32 to index
    %c0_51 = arith.constant 0 : index
    %c0_52 = arith.constant 0 : index
    %175 = vector.load %arg13[%174, %c0_51, %c0_52] : memref<8x2x128xf32, #tpu.memory_space<vmem>>, vector<1x2x64xf32>
    %176 = vector.shape_cast %175 : vector<1x2x64xf32> to vector<2x64xf32>
    %177 = vector.shape_cast %173 : vector<2x64xf32> to vector<1x2x64xf32>
    tpu.vector_store %arg13[%174, %c0_51, %c0_52], %177 {strides = array<i32>} : memref<8x2x128xf32, #tpu.memory_space<vmem>>, vector<1x2x64xf32>,
    %178 = vector.extract_strided_slice %172 {offsets = [0, 64], sizes = [2, 64], strides = [1, 1]} : vector<2x128xf32> to vector<2x64xf32>
    %c7_i32_53 = arith.constant 7 : i32
    %179 = arith.subi %c7_i32_53, %c3_i32 : i32
    %180 = arith.index_cast %179 : i32 to index
    %c0_54 = arith.constant 0 : index
    %c64_55 = arith.constant 64 : index
    %181 = vector.load %arg13[%180, %c0_54, %c64_55] : memref<8x2x128xf32, #tpu.memory_space<vmem>>, vector<1x2x64xf32>
    %182 = vector.shape_cast %181 : vector<1x2x64xf32> to vector<2x64xf32>
    %183 = vector.shape_cast %178 : vector<2x64xf32> to vector<1x2x64xf32>
    tpu.vector_store %arg13[%180, %c0_54, %c64_55], %183 {strides = array<i32>} : memref<8x2x128xf32, #tpu.memory_space<vmem>>, vector<1x2x64xf32>,
    %c4_i32 = arith.constant 4 : i32
    %184 = arith.index_cast %c4_i32 : i32 to index
    %c0_56 = arith.constant 0 : index
    %c0_57 = arith.constant 0 : index
    %185 = vector.load %arg12[%184, %c0_56, %c0_57] : memref<8x2x384xf32, #tpu.memory_space<vmem>>, vector<1x2x384xf32>
    %186 = vector.shape_cast %185 : vector<1x2x384xf32> to vector<2x384xf32>
    %cst_58 = arith.constant dense<0.000000e+00> : vector<2x384xf32>
    %187 = tpu.matmul %172, %9, %cst_58 {dimension_numbers = #tpu.dot_dimension_numbers<[1], [0], [0], [1], [0, 0, 1, 1], [], []>} : vector<2x128xf32>, vector<128x384xf32>, vector<2x384xf32> -> vector<2x384xf32>
    %188 = vector.extract_strided_slice %186 {offsets = [0, 0], sizes = [2, 128], strides = [1, 1]} : vector<2x384xf32> to vector<2x128xf32>
    %189 = vector.extract_strided_slice %187 {offsets = [0, 0], sizes = [2, 128], strides = [1, 1]} : vector<2x384xf32> to vector<2x128xf32>
    %190 = arith.addf %188, %189 : vector<2x128xf32>
    %191 = arith.negf %190 : vector<2x128xf32>
    %192 = math.exp %191 : vector<2x128xf32>
    %cst_59 = arith.constant 1.000000e+00 : f32
    %193 = vector.broadcast %cst_59 : f32 to vector<2x128xf32>
    %194 = arith.addf %193, %192 : vector<2x128xf32>
    %195 = arith.divf %193, %194 : vector<2x128xf32>
    %196 = vector.extract_strided_slice %186 {offsets = [0, 128], sizes = [2, 128], strides = [1, 1]} : vector<2x384xf32> to vector<2x128xf32>
    %197 = vector.extract_strided_slice %187 {offsets = [0, 128], sizes = [2, 128], strides = [1, 1]} : vector<2x384xf32> to vector<2x128xf32>
    %198 = arith.addf %196, %197 : vector<2x128xf32>
    %199 = arith.negf %198 : vector<2x128xf32>
    %200 = math.exp %199 : vector<2x128xf32>
    %cst_60 = arith.constant 1.000000e+00 : f32
    %201 = vector.broadcast %cst_60 : f32 to vector<2x128xf32>
    %202 = arith.addf %201, %200 : vector<2x128xf32>
    %203 = arith.divf %201, %202 : vector<2x128xf32>
    %204 = vector.extract_strided_slice %186 {offsets = [0, 256], sizes = [2, 128], strides = [1, 1]} : vector<2x384xf32> to vector<2x128xf32>
    %205 = vector.extract_strided_slice %187 {offsets = [0, 256], sizes = [2, 128], strides = [1, 1]} : vector<2x384xf32> to vector<2x128xf32>
    %206 = vector.broadcast %10 : vector<1x128xf32> to vector<2x128xf32>
    %207 = arith.addf %205, %206 : vector<2x128xf32>
    %208 = arith.mulf %195, %207 : vector<2x128xf32>
    %209 = arith.addf %204, %208 : vector<2x128xf32>
    %210 = math.tanh %209 : vector<2x128xf32>
    %cst_61 = arith.constant 1.000000e+00 : f32
    %211 = vector.broadcast %cst_61 : f32 to vector<2x128xf32>
    %212 = arith.subf %211, %203 : vector<2x128xf32>
    %213 = arith.mulf %212, %210 : vector<2x128xf32>
    %214 = arith.mulf %203, %172 : vector<2x128xf32>
    %215 = arith.addf %213, %214 : vector<2x128xf32>
    %216 = vector.extract_strided_slice %215 {offsets = [0, 0], sizes = [2, 64], strides = [1, 1]} : vector<2x128xf32> to vector<2x64xf32>
    %217 = arith.index_cast %c4_i32 : i32 to index
    %c0_62 = arith.constant 0 : index
    %c0_63 = arith.constant 0 : index
    %218 = vector.load %arg13[%217, %c0_62, %c0_63] : memref<8x2x128xf32, #tpu.memory_space<vmem>>, vector<1x2x64xf32>
    %219 = vector.shape_cast %218 : vector<1x2x64xf32> to vector<2x64xf32>
    %220 = vector.shape_cast %216 : vector<2x64xf32> to vector<1x2x64xf32>
    tpu.vector_store %arg13[%217, %c0_62, %c0_63], %220 {strides = array<i32>} : memref<8x2x128xf32, #tpu.memory_space<vmem>>, vector<1x2x64xf32>,
    %221 = vector.extract_strided_slice %215 {offsets = [0, 64], sizes = [2, 64], strides = [1, 1]} : vector<2x128xf32> to vector<2x64xf32>
    %c7_i32_64 = arith.constant 7 : i32
    %222 = arith.subi %c7_i32_64, %c4_i32 : i32
    %223 = arith.index_cast %222 : i32 to index
    %c0_65 = arith.constant 0 : index
    %c64_66 = arith.constant 64 : index
    %224 = vector.load %arg13[%223, %c0_65, %c64_66] : memref<8x2x128xf32, #tpu.memory_space<vmem>>, vector<1x2x64xf32>
    %225 = vector.shape_cast %224 : vector<1x2x64xf32> to vector<2x64xf32>
    %226 = vector.shape_cast %221 : vector<2x64xf32> to vector<1x2x64xf32>
    tpu.vector_store %arg13[%223, %c0_65, %c64_66], %226 {strides = array<i32>} : memref<8x2x128xf32, #tpu.memory_space<vmem>>, vector<1x2x64xf32>,
    %c5_i32 = arith.constant 5 : i32
    %227 = arith.index_cast %c5_i32 : i32 to index
    %c0_67 = arith.constant 0 : index
    %c0_68 = arith.constant 0 : index
    %228 = vector.load %arg12[%227, %c0_67, %c0_68] : memref<8x2x384xf32, #tpu.memory_space<vmem>>, vector<1x2x384xf32>
    %229 = vector.shape_cast %228 : vector<1x2x384xf32> to vector<2x384xf32>
    %cst_69 = arith.constant dense<0.000000e+00> : vector<2x384xf32>
    %230 = tpu.matmul %215, %9, %cst_69 {dimension_numbers = #tpu.dot_dimension_numbers<[1], [0], [0], [1], [0, 0, 1, 1], [], []>} : vector<2x128xf32>, vector<128x384xf32>, vector<2x384xf32> -> vector<2x384xf32>
    %231 = vector.extract_strided_slice %229 {offsets = [0, 0], sizes = [2, 128], strides = [1, 1]} : vector<2x384xf32> to vector<2x128xf32>
    %232 = vector.extract_strided_slice %230 {offsets = [0, 0], sizes = [2, 128], strides = [1, 1]} : vector<2x384xf32> to vector<2x128xf32>
    %233 = arith.addf %231, %232 : vector<2x128xf32>
    %234 = arith.negf %233 : vector<2x128xf32>
    %235 = math.exp %234 : vector<2x128xf32>
    %cst_70 = arith.constant 1.000000e+00 : f32
    %236 = vector.broadcast %cst_70 : f32 to vector<2x128xf32>
    %237 = arith.addf %236, %235 : vector<2x128xf32>
    %238 = arith.divf %236, %237 : vector<2x128xf32>
    %239 = vector.extract_strided_slice %229 {offsets = [0, 128], sizes = [2, 128], strides = [1, 1]} : vector<2x384xf32> to vector<2x128xf32>
    %240 = vector.extract_strided_slice %230 {offsets = [0, 128], sizes = [2, 128], strides = [1, 1]} : vector<2x384xf32> to vector<2x128xf32>
    %241 = arith.addf %239, %240 : vector<2x128xf32>
    %242 = arith.negf %241 : vector<2x128xf32>
    %243 = math.exp %242 : vector<2x128xf32>
    %cst_71 = arith.constant 1.000000e+00 : f32
    %244 = vector.broadcast %cst_71 : f32 to vector<2x128xf32>
    %245 = arith.addf %244, %243 : vector<2x128xf32>
    %246 = arith.divf %244, %245 : vector<2x128xf32>
    %247 = vector.extract_strided_slice %229 {offsets = [0, 256], sizes = [2, 128], strides = [1, 1]} : vector<2x384xf32> to vector<2x128xf32>
    %248 = vector.extract_strided_slice %230 {offsets = [0, 256], sizes = [2, 128], strides = [1, 1]} : vector<2x384xf32> to vector<2x128xf32>
    %249 = vector.broadcast %10 : vector<1x128xf32> to vector<2x128xf32>
    %250 = arith.addf %248, %249 : vector<2x128xf32>
    %251 = arith.mulf %238, %250 : vector<2x128xf32>
    %252 = arith.addf %247, %251 : vector<2x128xf32>
    %253 = math.tanh %252 : vector<2x128xf32>
    %cst_72 = arith.constant 1.000000e+00 : f32
    %254 = vector.broadcast %cst_72 : f32 to vector<2x128xf32>
    %255 = arith.subf %254, %246 : vector<2x128xf32>
    %256 = arith.mulf %255, %253 : vector<2x128xf32>
    %257 = arith.mulf %246, %215 : vector<2x128xf32>
    %258 = arith.addf %256, %257 : vector<2x128xf32>
    %259 = vector.extract_strided_slice %258 {offsets = [0, 0], sizes = [2, 64], strides = [1, 1]} : vector<2x128xf32> to vector<2x64xf32>
    %260 = arith.index_cast %c5_i32 : i32 to index
    %c0_73 = arith.constant 0 : index
    %c0_74 = arith.constant 0 : index
    %261 = vector.load %arg13[%260, %c0_73, %c0_74] : memref<8x2x128xf32, #tpu.memory_space<vmem>>, vector<1x2x64xf32>
    %262 = vector.shape_cast %261 : vector<1x2x64xf32> to vector<2x64xf32>
    %263 = vector.shape_cast %259 : vector<2x64xf32> to vector<1x2x64xf32>
    tpu.vector_store %arg13[%260, %c0_73, %c0_74], %263 {strides = array<i32>} : memref<8x2x128xf32, #tpu.memory_space<vmem>>, vector<1x2x64xf32>,
    %264 = vector.extract_strided_slice %258 {offsets = [0, 64], sizes = [2, 64], strides = [1, 1]} : vector<2x128xf32> to vector<2x64xf32>
    %c7_i32_75 = arith.constant 7 : i32
    %265 = arith.subi %c7_i32_75, %c5_i32 : i32
    %266 = arith.index_cast %265 : i32 to index
    %c0_76 = arith.constant 0 : index
    %c64_77 = arith.constant 64 : index
    %267 = vector.load %arg13[%266, %c0_76, %c64_77] : memref<8x2x128xf32, #tpu.memory_space<vmem>>, vector<1x2x64xf32>
    %268 = vector.shape_cast %267 : vector<1x2x64xf32> to vector<2x64xf32>
    %269 = vector.shape_cast %264 : vector<2x64xf32> to vector<1x2x64xf32>
    tpu.vector_store %arg13[%266, %c0_76, %c64_77], %269 {strides = array<i32>} : memref<8x2x128xf32, #tpu.memory_space<vmem>>, vector<1x2x64xf32>,
    %c6_i32 = arith.constant 6 : i32
    %270 = arith.index_cast %c6_i32 : i32 to index
    %c0_78 = arith.constant 0 : index
    %c0_79 = arith.constant 0 : index
    %271 = vector.load %arg12[%270, %c0_78, %c0_79] : memref<8x2x384xf32, #tpu.memory_space<vmem>>, vector<1x2x384xf32>
    %272 = vector.shape_cast %271 : vector<1x2x384xf32> to vector<2x384xf32>
    %cst_80 = arith.constant dense<0.000000e+00> : vector<2x384xf32>
    %273 = tpu.matmul %258, %9, %cst_80 {dimension_numbers = #tpu.dot_dimension_numbers<[1], [0], [0], [1], [0, 0, 1, 1], [], []>} : vector<2x128xf32>, vector<128x384xf32>, vector<2x384xf32> -> vector<2x384xf32>
    %274 = vector.extract_strided_slice %272 {offsets = [0, 0], sizes = [2, 128], strides = [1, 1]} : vector<2x384xf32> to vector<2x128xf32>
    %275 = vector.extract_strided_slice %273 {offsets = [0, 0], sizes = [2, 128], strides = [1, 1]} : vector<2x384xf32> to vector<2x128xf32>
    %276 = arith.addf %274, %275 : vector<2x128xf32>
    %277 = arith.negf %276 : vector<2x128xf32>
    %278 = math.exp %277 : vector<2x128xf32>
    %cst_81 = arith.constant 1.000000e+00 : f32
    %279 = vector.broadcast %cst_81 : f32 to vector<2x128xf32>
    %280 = arith.addf %279, %278 : vector<2x128xf32>
    %281 = arith.divf %279, %280 : vector<2x128xf32>
    %282 = vector.extract_strided_slice %272 {offsets = [0, 128], sizes = [2, 128], strides = [1, 1]} : vector<2x384xf32> to vector<2x128xf32>
    %283 = vector.extract_strided_slice %273 {offsets = [0, 128], sizes = [2, 128], strides = [1, 1]} : vector<2x384xf32> to vector<2x128xf32>
    %284 = arith.addf %282, %283 : vector<2x128xf32>
    %285 = arith.negf %284 : vector<2x128xf32>
    %286 = math.exp %285 : vector<2x128xf32>
    %cst_82 = arith.constant 1.000000e+00 : f32
    %287 = vector.broadcast %cst_82 : f32 to vector<2x128xf32>
    %288 = arith.addf %287, %286 : vector<2x128xf32>
    %289 = arith.divf %287, %288 : vector<2x128xf32>
    %290 = vector.extract_strided_slice %272 {offsets = [0, 256], sizes = [2, 128], strides = [1, 1]} : vector<2x384xf32> to vector<2x128xf32>
    %291 = vector.extract_strided_slice %273 {offsets = [0, 256], sizes = [2, 128], strides = [1, 1]} : vector<2x384xf32> to vector<2x128xf32>
    %292 = vector.broadcast %10 : vector<1x128xf32> to vector<2x128xf32>
    %293 = arith.addf %291, %292 : vector<2x128xf32>
    %294 = arith.mulf %281, %293 : vector<2x128xf32>
    %295 = arith.addf %290, %294 : vector<2x128xf32>
    %296 = math.tanh %295 : vector<2x128xf32>
    %cst_83 = arith.constant 1.000000e+00 : f32
    %297 = vector.broadcast %cst_83 : f32 to vector<2x128xf32>
    %298 = arith.subf %297, %289 : vector<2x128xf32>
    %299 = arith.mulf %298, %296 : vector<2x128xf32>
    %300 = arith.mulf %289, %258 : vector<2x128xf32>
    %301 = arith.addf %299, %300 : vector<2x128xf32>
    %302 = vector.extract_strided_slice %301 {offsets = [0, 0], sizes = [2, 64], strides = [1, 1]} : vector<2x128xf32> to vector<2x64xf32>
    %303 = arith.index_cast %c6_i32 : i32 to index
    %c0_84 = arith.constant 0 : index
    %c0_85 = arith.constant 0 : index
    %304 = vector.load %arg13[%303, %c0_84, %c0_85] : memref<8x2x128xf32, #tpu.memory_space<vmem>>, vector<1x2x64xf32>
    %305 = vector.shape_cast %304 : vector<1x2x64xf32> to vector<2x64xf32>
    %306 = vector.shape_cast %302 : vector<2x64xf32> to vector<1x2x64xf32>
    tpu.vector_store %arg13[%303, %c0_84, %c0_85], %306 {strides = array<i32>} : memref<8x2x128xf32, #tpu.memory_space<vmem>>, vector<1x2x64xf32>,
    %307 = vector.extract_strided_slice %301 {offsets = [0, 64], sizes = [2, 64], strides = [1, 1]} : vector<2x128xf32> to vector<2x64xf32>
    %c7_i32_86 = arith.constant 7 : i32
    %308 = arith.subi %c7_i32_86, %c6_i32 : i32
    %309 = arith.index_cast %308 : i32 to index
    %c0_87 = arith.constant 0 : index
    %c64_88 = arith.constant 64 : index
    %310 = vector.load %arg13[%309, %c0_87, %c64_88] : memref<8x2x128xf32, #tpu.memory_space<vmem>>, vector<1x2x64xf32>
    %311 = vector.shape_cast %310 : vector<1x2x64xf32> to vector<2x64xf32>
    %312 = vector.shape_cast %307 : vector<2x64xf32> to vector<1x2x64xf32>
    tpu.vector_store %arg13[%309, %c0_87, %c64_88], %312 {strides = array<i32>} : memref<8x2x128xf32, #tpu.memory_space<vmem>>, vector<1x2x64xf32>,
    %c7_i32_89 = arith.constant 7 : i32
    %313 = arith.index_cast %c7_i32_89 : i32 to index
    %c0_90 = arith.constant 0 : index
    %c0_91 = arith.constant 0 : index
    %314 = vector.load %arg12[%313, %c0_90, %c0_91] : memref<8x2x384xf32, #tpu.memory_space<vmem>>, vector<1x2x384xf32>
    %315 = vector.shape_cast %314 : vector<1x2x384xf32> to vector<2x384xf32>
    %cst_92 = arith.constant dense<0.000000e+00> : vector<2x384xf32>
    %316 = tpu.matmul %301, %9, %cst_92 {dimension_numbers = #tpu.dot_dimension_numbers<[1], [0], [0], [1], [0, 0, 1, 1], [], []>} : vector<2x128xf32>, vector<128x384xf32>, vector<2x384xf32> -> vector<2x384xf32>
    %317 = vector.extract_strided_slice %315 {offsets = [0, 0], sizes = [2, 128], strides = [1, 1]} : vector<2x384xf32> to vector<2x128xf32>
    %318 = vector.extract_strided_slice %316 {offsets = [0, 0], sizes = [2, 128], strides = [1, 1]} : vector<2x384xf32> to vector<2x128xf32>
    %319 = arith.addf %317, %318 : vector<2x128xf32>
    %320 = arith.negf %319 : vector<2x128xf32>
    %321 = math.exp %320 : vector<2x128xf32>
    %cst_93 = arith.constant 1.000000e+00 : f32
    %322 = vector.broadcast %cst_93 : f32 to vector<2x128xf32>
    %323 = arith.addf %322, %321 : vector<2x128xf32>
    %324 = arith.divf %322, %323 : vector<2x128xf32>
    %325 = vector.extract_strided_slice %315 {offsets = [0, 128], sizes = [2, 128], strides = [1, 1]} : vector<2x384xf32> to vector<2x128xf32>
    %326 = vector.extract_strided_slice %316 {offsets = [0, 128], sizes = [2, 128], strides = [1, 1]} : vector<2x384xf32> to vector<2x128xf32>
    %327 = arith.addf %325, %326 : vector<2x128xf32>
    %328 = arith.negf %327 : vector<2x128xf32>
    %329 = math.exp %328 : vector<2x128xf32>
    %cst_94 = arith.constant 1.000000e+00 : f32
    %330 = vector.broadcast %cst_94 : f32 to vector<2x128xf32>
    %331 = arith.addf %330, %329 : vector<2x128xf32>
    %332 = arith.divf %330, %331 : vector<2x128xf32>
    %333 = vector.extract_strided_slice %315 {offsets = [0, 256], sizes = [2, 128], strides = [1, 1]} : vector<2x384xf32> to vector<2x128xf32>
    %334 = vector.extract_strided_slice %316 {offsets = [0, 256], sizes = [2, 128], strides = [1, 1]} : vector<2x384xf32> to vector<2x128xf32>
    %335 = vector.broadcast %10 : vector<1x128xf32> to vector<2x128xf32>
    %336 = arith.addf %334, %335 : vector<2x128xf32>
    %337 = arith.mulf %324, %336 : vector<2x128xf32>
    %338 = arith.addf %333, %337 : vector<2x128xf32>
    %339 = math.tanh %338 : vector<2x128xf32>
    %cst_95 = arith.constant 1.000000e+00 : f32
    %340 = vector.broadcast %cst_95 : f32 to vector<2x128xf32>
    %341 = arith.subf %340, %332 : vector<2x128xf32>
    %342 = arith.mulf %341, %339 : vector<2x128xf32>
    %343 = arith.mulf %332, %301 : vector<2x128xf32>
    %344 = arith.addf %342, %343 : vector<2x128xf32>
    %345 = vector.extract_strided_slice %344 {offsets = [0, 0], sizes = [2, 64], strides = [1, 1]} : vector<2x128xf32> to vector<2x64xf32>
    %346 = arith.index_cast %c7_i32_89 : i32 to index
    %c0_96 = arith.constant 0 : index
    %c0_97 = arith.constant 0 : index
    %347 = vector.load %arg13[%346, %c0_96, %c0_97] : memref<8x2x128xf32, #tpu.memory_space<vmem>>, vector<1x2x64xf32>
    %348 = vector.shape_cast %347 : vector<1x2x64xf32> to vector<2x64xf32>
    %349 = vector.shape_cast %345 : vector<2x64xf32> to vector<1x2x64xf32>
    tpu.vector_store %arg13[%346, %c0_96, %c0_97], %349 {strides = array<i32>} : memref<8x2x128xf32, #tpu.memory_space<vmem>>, vector<1x2x64xf32>,
    %350 = vector.extract_strided_slice %344 {offsets = [0, 64], sizes = [2, 64], strides = [1, 1]} : vector<2x128xf32> to vector<2x64xf32>
    %c7_i32_98 = arith.constant 7 : i32
    %351 = arith.subi %c7_i32_98, %c7_i32_89 : i32
    %352 = arith.index_cast %351 : i32 to index
    %c0_99 = arith.constant 0 : index
    %c64_100 = arith.constant 64 : index
    %353 = vector.load %arg13[%352, %c0_99, %c64_100] : memref<8x2x128xf32, #tpu.memory_space<vmem>>, vector<1x2x64xf32>
    %354 = vector.shape_cast %353 : vector<1x2x64xf32> to vector<2x64xf32>
    %355 = vector.shape_cast %350 : vector<2x64xf32> to vector<1x2x64xf32>
    tpu.vector_store %arg13[%352, %c0_99, %c64_100], %355 {strides = array<i32>} : memref<8x2x128xf32, #tpu.memory_space<vmem>>, vector<1x2x64xf32>,
    %c8_i32 = arith.constant 8 : i32
    %c0_101 = arith.constant 0 : index
    %c0_102 = arith.constant 0 : index
    %356 = vector.load %arg10[%c0_101, %c0_102] : memref<2x128xf32, #tpu.memory_space<vmem>>, vector<2x128xf32>
    tpu.vector_store %arg10[%c0_101, %c0_102], %344 {strides = array<i32>} : memref<2x128xf32, #tpu.memory_space<vmem>>, vector<2x128xf32>,
    %c0_103 = arith.constant 0 : index
    %c0_104 = arith.constant 0 : index
    %c0_105 = arith.constant 0 : index
    %357 = vector.load %arg13[%c0_103, %c0_104, %c0_105] : memref<8x2x128xf32, #tpu.memory_space<vmem>>, vector<8x2x128xf32>
    %358 = vector.shape_cast %357 : vector<8x2x128xf32> to vector<16x128xf32>
    %c0_106 = arith.constant 0 : index
    %c0_107 = arith.constant 0 : index
    %359 = vector.load %arg6[%c0_106, %c0_107] : memref<128x128xf32, #tpu.memory_space<vmem>>, vector<128x128xf32>
    %cst_108 = arith.constant dense<0.000000e+00> : vector<16x128xf32>
    %360 = tpu.matmul %358, %359, %cst_108 {dimension_numbers = #tpu.dot_dimension_numbers<[1], [0], [0], [1], [0, 0, 1, 1], [], []>} : vector<16x128xf32>, vector<128x128xf32>, vector<16x128xf32> -> vector<16x128xf32>
    %c0_109 = arith.constant 0 : index
    %c0_110 = arith.constant 0 : index
    %361 = vector.load %arg7[%c0_109, %c0_110] : memref<1x128xf32, #tpu.memory_space<vmem>>, vector<1x128xf32>
    %362 = vector.broadcast %361 : vector<1x128xf32> to vector<16x128xf32>
    %363 = arith.addf %360, %362 : vector<16x128xf32>
    %364 = math.tanh %363 : vector<16x128xf32>
    %c0_111 = arith.constant 0 : index
    %c0_112 = arith.constant 0 : index
    %365 = vector.load %arg8[%c0_111, %c0_112] : memref<128x128xf32, #tpu.memory_space<vmem>>, vector<128x128xf32>
    %cst_113 = arith.constant dense<0.000000e+00> : vector<16x128xf32>
    %366 = tpu.matmul %364, %365, %cst_113 {dimension_numbers = #tpu.dot_dimension_numbers<[1], [0], [0], [1], [0, 0, 1, 1], [], []>} : vector<16x128xf32>, vector<128x128xf32>, vector<16x128xf32> -> vector<16x128xf32>
    %367 = vector.shape_cast %366 : vector<16x128xf32> to vector<8x2x128xf32>
    %cst_114 = arith.constant dense<0xFF800000> : vector<2x128xf32>
    %368 = vector.multi_reduction <maximumf>, %367, %cst_114 [0] : vector<8x2x128xf32> to vector<2x128xf32>
    %369 = vector.shape_cast %368 : vector<2x128xf32> to vector<1x2x128xf32>
    %370 = vector.broadcast %369 : vector<1x2x128xf32> to vector<8x2x128xf32>
    %371 = arith.subf %367, %370 : vector<8x2x128xf32>
    %372 = math.exp %371 : vector<8x2x128xf32>
    %cst_115 = arith.constant dense<0.000000e+00> : vector<2x128xf32>
    %373 = vector.multi_reduction <add>, %372, %cst_115 [0] : vector<8x2x128xf32> to vector<2x128xf32>
    %374 = vector.shape_cast %373 : vector<2x128xf32> to vector<1x2x128xf32>
    %375 = tpu.reciprocal %374 : vector<1x2x128xf32> -> vector<1x2x128xf32>
    %376 = vector.broadcast %375 : vector<1x2x128xf32> to vector<8x2x128xf32>
    %377 = arith.mulf %372, %376 : vector<8x2x128xf32>
    %c0_116 = arith.constant 0 : index
    %c0_117 = arith.constant 0 : index
    %c0_118 = arith.constant 0 : index
    %378 = vector.load %arg11[%c0_116, %c0_117, %c0_118] : memref<8x2x128xf32, #tpu.memory_space<vmem>>, vector<8x2x128xf32>
    tpu.vector_store %arg11[%c0_116, %c0_117, %c0_118], %377 {strides = array<i32>} : memref<8x2x128xf32, #tpu.memory_space<vmem>>, vector<8x2x128xf32>,
    %379 = arith.mulf %377, %357 : vector<8x2x128xf32>
    %cst_119 = arith.constant dense<0.000000e+00> : vector<2x128xf32>
    %380 = vector.multi_reduction <add>, %379, %cst_119 [0] : vector<8x2x128xf32> to vector<2x128xf32>
    %c0_120 = arith.constant 0 : index
    %c0_121 = arith.constant 0 : index
    %381 = vector.load %arg9[%c0_120, %c0_121] : memref<2x128xf32, #tpu.memory_space<vmem>>, vector<2x128xf32>
    tpu.vector_store %arg9[%c0_120, %c0_121], %380 {strides = array<i32>} : memref<2x128xf32, #tpu.memory_space<vmem>>, vector<2x128xf32>,
    return
  }
  func.func @transform_0(%arg0: i32) -> (i32, i32, i32) {
    %c0_i32 = arith.constant 0 : i32
    %c0_i32_0 = arith.constant 0 : i32
    %c0_i32_1 = arith.constant 0 : i32
    return %c0_i32, %arg0, %c0_i32_0 : i32, i32, i32
  }
  func.func @transform_1(%arg0: i32) -> (i32, i32) {
    %c0_i32 = arith.constant 0 : i32
    %c0_i32_0 = arith.constant 0 : i32
    %c0_i32_1 = arith.constant 0 : i32
    return %c0_i32, %c0_i32_0 : i32, i32
  }
  func.func @transform_2(%arg0: i32) -> (i32, i32) {
    %c0_i32 = arith.constant 0 : i32
    %c0_i32_0 = arith.constant 0 : i32
    %c0_i32_1 = arith.constant 0 : i32
    return %c0_i32, %c0_i32_0 : i32, i32
  }
  func.func @transform_3(%arg0: i32) -> (i32, i32) {
    %c0_i32 = arith.constant 0 : i32
    %c0_i32_0 = arith.constant 0 : i32
    %c0_i32_1 = arith.constant 0 : i32
    return %c0_i32, %c0_i32_0 : i32, i32
  }
  func.func @transform_4(%arg0: i32) -> (i32, i32) {
    %c0_i32 = arith.constant 0 : i32
    %c0_i32_0 = arith.constant 0 : i32
    %c0_i32_1 = arith.constant 0 : i32
    return %c0_i32, %c0_i32_0 : i32, i32
  }
  func.func @transform_5(%arg0: i32) -> (i32, i32) {
    %c0_i32 = arith.constant 0 : i32
    %c0_i32_0 = arith.constant 0 : i32
    %c0_i32_1 = arith.constant 0 : i32
    return %c0_i32, %c0_i32_0 : i32, i32
  }
  func.func @transform_6(%arg0: i32) -> (i32, i32) {
    %c0_i32 = arith.constant 0 : i32
    %c0_i32_0 = arith.constant 0 : i32
    %c0_i32_1 = arith.constant 0 : i32
    return %c0_i32, %c0_i32_0 : i32, i32
  }
  func.func @transform_7(%arg0: i32) -> (i32, i32) {
    %c0_i32 = arith.constant 0 : i32
    %c0_i32_0 = arith.constant 0 : i32
    %c0_i32_1 = arith.constant 0 : i32
    return %c0_i32, %c0_i32_0 : i32, i32
  }
  func.func @transform_8(%arg0: i32) -> (i32, i32) {
    %c0_i32 = arith.constant 0 : i32
    %c0_i32_0 = arith.constant 0 : i32
    return %arg0, %c0_i32 : i32, i32
  }
  func.func @transform_9(%arg0: i32) -> (i32, i32) {
    %c0_i32 = arith.constant 0 : i32
    %c0_i32_0 = arith.constant 0 : i32
    return %arg0, %c0_i32 : i32, i32
  }
  func.func @transform_10(%arg0: i32) -> (i32, i32, i32) {
    %c0_i32 = arith.constant 0 : i32
    %c0_i32_0 = arith.constant 0 : i32
    %c0_i32_1 = arith.constant 0 : i32
    return %c0_i32, %arg0, %c0_i32_0 : i32, i32, i32
  }
}

</mosaic_0001>

<bundles_post_ra>
// kernel: _sentence_encoder_impl.1
= control target key start
LH: loop header
LB: loop body
LE: loop exit
PB: predicated region body
PF: predicated region fallthrough
CT: control target
= control target key end

     0   :  { %vm97_vm0 = vcmask 523264   ;;  %vm181_vm1 = vcmask 1041408   ;;  %vm185_vm2 = vcmask 1043458   ;;  %vm190_vm3 = vcmask 1045508   ;;  %s2975_s1 = inlined_call_operand.vmem [shape: f32[64,384], index: 1, kind: input, shape index: {}]   ;;  %s2976_s3 = inlined_call_operand.vmem [shape: f32[128,384], index: 3, kind: input, shape index: {}]   ;;  %s2977_s0 = inlined_call_operand.vmem [shape: f32[8,2,64], index: 0, kind: input, shape index: {}]   ;;  %s2978_s4 = inlined_call_operand.vmem [shape: f32[1,128], index: 4, kind: input, shape index: {}]   ;;  %s2979_s2 = inlined_call_operand.vmem [shape: f32[1,384], index: 2, kind: input, shape index: {}]   ;;  %s2980_s6 = inlined_call_operand.vmem [shape: f32[1,128], index: 6, kind: input, shape index: {}]   ;;  %s2981_s5 = inlined_call_operand.vmem [shape: f32[128,128], index: 5, kind: input, shape index: {}]   ;;  %s2982_s7 = inlined_call_operand.vmem [shape: f32[128,128], index: 7, kind: input, shape index: {}]   ;;  %s2983_s9 = inlined_call_operand.vmem [shape: f32[2,128], index: 9, kind: output, shape index: {1}]   ;;  %s2984_s10 = inlined_call_operand.vmem [shape: f32[8,2,128], index: 10, kind: output, shape index: {2}]   ;;  %s2985_s8 = inlined_call_operand.vmem [shape: f32[2,128], index: 8, kind: output, shape index: {0}]  }
   0x1   :  { %v61_v0 = vld [vmem:[%s2975_s1 + $0xa8] sm:$0xff]  ;;  %v58_v1 = vld [vmem:[%s2975_s1 + $0x90] sm:$0xff]  ;;  %v55_v3 = vld [vmem:[%s2975_s1 + $0x78] sm:$0xff]  ;;  %vm194_vm4 = vcmask 1045504   ;;  %vm183_vm5 = vcmask 1043456   ;;  %vm187_vm6 = vcmask 1045506  }
   0x2   :  { %110 = vmatpush.msra.mxu1 %v61_v0  ;;  %v1716_v2 = vld [vmem:[%s2976_s3 + $0x168] sm:$0xff]  ;;  %v1725_v4 = vld [vmem:[%s2976_s3 + $0x150] sm:$0xff]  ;;  %v63_v5 = vld [vmem:[%s2975_s1 + $0xb8] sm:$0xff]  ;;  %vm391_vm15 = vcmask 517120  }
   0x3   :  { %275 = vmatpush.msra.mxu3 %v1716_v2  ;;  %156 = vmatpush.msra.mxu2 %v63_v5  ;;  %v1733_v6 = vld [vmem:[%s2976_s3 + $0x138] sm:$0xff]  ;;  %v60_v7 = vld [vmem:[%s2975_s1 + $0xa0] sm:$0xff]  ;;  %v49_v13 = vld [vmem:[%s2975_s1 + $0x48] sm:$0xff] }
   0x4   :  { %111 = vmatpush.msra.mxu1 %v58_v1  ;;  %v52_v8 = vld [vmem:[%s2975_s1 + $0x60] sm:$0xff]  ;;  %v57_v15 = vld [vmem:[%s2975_s1 + $0x88] sm:$0xff]  ;;  %v1774_v17 = vld [vmem:[%s2976_s3 + $0x170] sm:$0xff]  ;;  %v1651_v1 = vmov 0.0  }
   0x5   :  { %276 = vmatpush.msra.mxu3 %v1725_v4  ;;  %v32_v9 = vld [vmem:[%s2977_s0] sm:$0x3]  ;;  %157 = vmatpush.msra.mxu2 %v60_v7  ;;  %v33_v11 = vld [vmem:[%s2977_s0 + $0x2] sm:$0x3]  ;;  %v34_v12 = vld [vmem:[%s2977_s0 + $0x4] sm:$0x3] }
   0x6   :  { %112 = vmatpush.msra.mxu1 %v55_v3  ;;  %v1748_v10 = vld [vmem:[%s2976_s3 + $0x120] sm:$0xff]  ;;  %80 = vst [vmem:[#allocation1] ss:$4 sm:$0xff] %v32_v9  ;;  %v1769_v16 = vld [vmem:[%s2976_s3 + $0x108] sm:$0xff]  ;;  %v54_v18 = vld [vmem:[%s2975_s1 + $0x70] sm:$0xff]  ;;  %295 = vmatpush.msra.mxu0 %v1774_v17 }
   0x7   :  { %277 = vmatpush.msra.mxu3 %v1733_v6  ;;  %v35_v14 = vld [vmem:[%s2977_s0 + $0x6] sm:$0x3]  ;;  %82 = vst [vmem:[#allocation1 + $0x1] ss:$4 sm:$0xff] %v33_v11  ;;  %158 = vmatpush.msra.mxu2 %v57_v15  ;;  %v46_v19 = vld [vmem:[%s2975_s1 + $0x30] sm:$0xff]  ;;  %v43_v20 = vld [vmem:[%s2975_s1 + $0x18] sm:$0xff] }
   0x8   :  { %113 = vmatpush.msra.mxu1 %v52_v8  ;;  %84 = vst [vmem:[#allocation1 + $0x2] ss:$4 sm:$0xff] %v34_v12  ;;  %v1790_v21 = vld [vmem:[%s2976_s3 + $0x158] sm:$0xff]  ;;  %v1795_v22 = vld [vmem:[%s2976_s3 + $0xf0] sm:$0xff]  ;;  %v1803_v24 = vld [vmem:[%s2976_s3 + $0x140] sm:$0xff] }
   0x9   :  { %278 = vmatpush.msra.mxu3 %v1748_v10  ;;  %86 = vst [vmem:[#allocation1 + $0x3] ss:$4 sm:$0xff] %v35_v14  ;;  %159 = vmatpush.msra.mxu2 %v54_v18  ;;  %v51_v23 = vld [vmem:[%s2975_s1 + $0x58] sm:$0xff]  ;;  %v40_v25 = vld [vmem:[%s2975_s1] sm:$0xff]  ;;  %v1821_v28 = vld [vmem:[%s2976_s3 + $0x128] sm:$0xff] }
   0xa   :  { %114 = vmatpush.msra.mxu1 %v49_v13  ;;  %296 = vmatpush.msra.mxu0 %v1790_v21  ;;  %v1813_v26 = vld [vmem:[%s2976_s3 + $0xd8] sm:$0xff]  ;;  %v48_v27 = vld [vmem:[%s2975_s1 + $0x40] sm:$0xff]  ;;  %v36_v29 = vld [vmem:[%s2977_s0 + $0x8] sm:$0x3] }
   0xb   :  { %279 = vmatpush.msra.mxu3 %v1769_v16  ;;  %160 = vmatpush.msra.mxu2 %v51_v23  ;;  %v37_v30 = vld [vmem:[%s2977_s0 + $0xa] sm:$0x3]  ;;  %v38_v31 = vld [vmem:[%s2977_s0 + $0xc] sm:$0x3]  ;;  %v39_v32 = vld [vmem:[%s2977_s0 + $0xe] sm:$0x3] }
   0xc   :  { %115 = vmatpush.msra.mxu1 %v46_v19  ;;  %297 = vmatpush.msra.mxu0 %v1803_v24  ;;  %88 = vst [vmem:[#allocation1 + $0x20] ss:$4 sm:$0xff] %v36_v29  ;;  %v62_v33 = vld [vmem:[%s2975_s1 + $0xb0] sm:$0xff]  ;;  %v1843_v34 = vld [vmem:[%s2976_s3 + $0xc0] sm:$0xff]  ;;  %v45_v35 = vld [vmem:[%s2975_s1 + $0x28] sm:$0xff] }
   0xd   :  { %280 = vmatpush.msra.mxu3 %v1795_v22  ;;  %161 = vmatpush.msra.mxu2 %v48_v27  ;;  %90 = vst [vmem:[#allocation1 + $0x21] ss:$4 sm:$0xff] %v37_v30  ;;  %v1853_v36 = vld [vmem:[%s2976_s3 + $0x110] sm:$0xff]  ;;  %v59_v37 = vld [vmem:[%s2975_s1 + $0x98] sm:$0xff]  ;;  %v1861_v38 = vld [vmem:[%s2976_s3 + $0xa8] sm:$0xff] }
   0xe   :  { %116 = vmatpush.msra.mxu1 %v43_v20  ;;  %298 = vmatpush.msra.mxu0 %v1821_v28  ;;  %92 = vst [vmem:[#allocation1 + $0x22] ss:$4 sm:$0xff] %v38_v31  ;;  %v42_v40 = vld [vmem:[%s2975_s1 + $0x10] sm:$0xff]  ;;  %v1870_v41 = vld [vmem:[%s2976_s3 + $0xf8] sm:$0xff]  ;;  %v56_v42 = vld [vmem:[%s2975_s1 + $0x80] sm:$0xff] }
   0xf   :  { %281 = vmatpush.msra.mxu3 %v1813_v26  ;;  %94 = vst [vmem:[#allocation1 + $0x23] ss:$4 sm:$0xff] %v39_v32  ;;  %162 = vmatpush.msra.mxu2 %v45_v35  ;;  %v1881_v43 = vld [vmem:[%s2976_s3 + $0x90] sm:$0xff]  ;;  %v1886_v44 = vld [vmem:[%s2976_s3 + $0xe0] sm:$0xff]  ;;  %v53_v45 = vld [vmem:[%s2975_s1 + $0x68] sm:$0xff] }
  0x10   :  { %117 = vmatpush.msra.mxu1 %v40_v25  ;;  %v95_v39 = vld.sshfl [vmem:[#allocation1] sm:$0xff pattern:$0x73625140]  ;;  %299 = vmatpush.msra.mxu0 %v1853_v36  ;;  %v1896_v46 = vld [vmem:[%s2976_s3 + $0x78] sm:$0xff]  ;;  %v1901_v47 = vld [vmem:[%s2976_s3 + $0xc8] sm:$0xff] }
  0x11   :  { %282 = vmatpush.msra.mxu3 %v1843_v34  ;;  %1475 = vmatmul.msk.f32.vlgmr.msra.gmra.mxu1 %vm97_vm0, %v95_v39  ;;  %v50_v48 = vld [vmem:[%s2975_s1 + $0x50] sm:$0xff]  ;;  %v1911_v50 = vld [vmem:[%s2976_s3 + $0x60] sm:$0xff]  ;;  %v47_v51 = vld [vmem:[%s2975_s1 + $0x38] sm:$0xff] }
  0x12   :  { %133 = vmatpush.msrb.mxu1 %v62_v33  ;;  %163 = vmatpush.msra.mxu2 %v42_v40  ;;  %v1922_v52 = vld [vmem:[%s2976_s3 + $0xb0] sm:$0xff]  ;;  %v1927_v53 = vld [vmem:[%s2976_s3 + $0x48] sm:$0xff]  ;;  %v44_v54 = vld [vmem:[%s2975_s1 + $0x20] sm:$0xff] }
  0x13   :  { %283 = vmatpush.msra.mxu3 %v1861_v38  ;;  %300 = vmatpush.msra.mxu0 %v1870_v41  ;;  %v1939_v55 = vld [vmem:[%s2976_s3 + $0x30] sm:$0xff]  ;;  %v1944_v56 = vld [vmem:[%s2976_s3 + $0x98] sm:$0xff]  ;;  %v41_v57 = vld [vmem:[%s2975_s1 + $0x8] sm:$0xff] }
  0x14   :  { %134 = vmatpush.msrb.mxu1 %v59_v37  ;;  %1479 = vmatmul.msk.f32.vlgmr.msra.gmra.mxu2 %vm97_vm0, %v95_v39  ;;  %3002 = vst [vmem:[#allocation4_spill] sm:$0xff] %v1939_v55  ;;  %v1955_v58 = vld [vmem:[%s2976_s3 + $0x18] sm:$0xff]  ;;  %v1960_v59 = vld [vmem:[%s2976_s3 + $0x80] sm:$0xff]  ;;  %v1980_v62 = vld [vmem:[%s2976_s3 + $0x68] sm:$0xff] }
  0x15   :  { %284 = vmatpush.msra.mxu3 %v1881_v43  ;;  %301 = vmatpush.msra.mxu0 %v1886_v44  ;;  %3003 = vst [vmem:[#allocation5_spill] sm:$0xff] %v1955_v58  ;;  %v1967_v60 = vld [vmem:[%s2976_s3 + $0x178] sm:$0xff]  ;;  %v1972_v61 = vld [vmem:[%s2976_s3] sm:$0xff]  ;;  %v1994_v0 = vld [vmem:[%s2976_s3 + $0x50] sm:$0xff] }
  0x16   :  { %135 = vmatpush.msrb.mxu1 %v56_v42  ;;  %v96_v49 = vld.sshfl [vmem:[#allocation1 + $0x20] sm:$0xff pattern:$0x73625140]  ;;  %398 = vmatpush.msrb.mxu2 %v1716_v2  ;;  %3004 = vst [vmem:[#allocation6_spill] sm:$0xff] %v1972_v61  ;;  %v2001_v3 = vld [vmem:[%s2976_s3 + $0x148] sm:$0xff]  ;;  %v2006_v5 = vld [vmem:[%s2976_s3 + $0x38] sm:$0xff] }
  0x17   :  { %285 = vmatpush.msra.mxu3 %v1896_v46  ;;  %302 = vmatpush.msra.mxu0 %v1901_v47  ;;  %v1986_v63 = vld [vmem:[%s2976_s3 + $0x160] sm:$0xff]  ;;  %3005 = vst [vmem:[#allocation7_spill] sm:$0xff] %v2006_v5  ;;  %v2014_v7 = vld [vmem:[%s2976_s3 + $0x130] sm:$0xff]  ;;  %v2029_v9 = vld [vmem:[%s2976_s3 + $0x8] sm:$0xff] }
  0x18   :  { %136 = vmatpush.msrb.mxu1 %v53_v45  ;;  %399 = vmatpush.msrb.mxu2 %v1725_v4  ;;  %v2020_v8 = vld [vmem:[%s2976_s3 + $0x20] sm:$0xff]  ;;  %3007 = vst [vmem:[#allocation9_spill] sm:$0xff] %v2029_v9  ;;  %v2035_v11 = vld [vmem:[%s2976_s3 + $0x118] sm:$0xff]  ;;  %v2053_v13 = vld [vmem:[%s2976_s3 + $0xe8] sm:$0xff] }
  0x19   :  { %1476 = vmatmul.msk.f32.gmra.mxu1 %vm97_vm0, %v96_v49  ;;  %286 = vmatpush.msra.mxu3 %v1911_v50  ;;  %3006 = vst [vmem:[#allocation8_spill] sm:$0xff] %v2020_v8  ;;  %v2044_v12 = vld [vmem:[%s2976_s3 + $0x100] sm:$0xff]  ;;  %v2061_v14 = vld [vmem:[%s2976_s3 + $0xd0] sm:$0xff]  ;;  %v2070_v15 = vld [vmem:[%s2976_s3 + $0xb8] sm:$0xff] }
  0x1a   :  { %137 = vmatpush.msrb.mxu1 %v50_v48  ;;  %303 = vmatpush.msra.mxu0 %v1922_v52  ;;  %v2079_v18 = vld [vmem:[%s2976_s3 + $0xa0] sm:$0xff]  ;;  %v2088_v19 = vld [vmem:[%s2976_s3 + $0x88] sm:$0xff]  ;;  %v2097_v20 = vld [vmem:[%s2976_s3 + $0x70] sm:$0xff] }
  0x1b   :  { %287 = vmatpush.msra.mxu3 %v1927_v53  ;;  %400 = vmatpush.msrb.mxu2 %v1733_v6  ;;  %v2106_v23 = vld [vmem:[%s2976_s3 + $0x58] sm:$0xff]  ;;  %v2115_v25 = vld [vmem:[%s2976_s3 + $0x40] sm:$0xff]  ;;  %v2124_v27 = vld [vmem:[%s2976_s3 + $0x28] sm:$0xff] }
  0x1c   :  { %138 = vmatpush.msrb.mxu1 %v47_v51  ;;  %1480 = vmatmul.msk.f32.gmra.mxu2 %vm97_vm0, %v96_v49  ;;  %3008 = vst [vmem:[#allocation10_spill] sm:$0xff] %v2124_v27  ;;  %v2133_v29 = vld [vmem:[%s2976_s3 + $0x10] sm:$0xff]  ;;  %v64_v32 = vld [vmem:[%s2979_s2] sm:$0x7] }
  0x1d   :  { %288 = vmatpush.msra.mxu3 %v1939_v55  ;;  %304 = vmatpush.msra.mxu0 %v1944_v56  ;;  %3009 = vst [vmem:[#allocation11_spill] sm:$0xff] %v2133_v29  ;;  %v68_v35 = vperm.slane %v64_v32, 2  ;;  %v67_v37 = vperm.slane %v64_v32, 1  ;;  %v66_v40 = vperm.slane %v64_v32, 0 }
  0x1e   :  { %139 = vmatpush.msrb.mxu1 %v44_v54  ;;  %401 = vmatpush.msrb.mxu2 %v1748_v10 }
  0x1f   :  { %289 = vmatpush.msra.mxu3 %v1955_v58  ;;  %305 = vmatpush.msra.mxu0 %v1960_v59 }
  0x20   :  { %140 = vmatpush.msrb.mxu1 %v41_v57  ;;  %402 = vmatpush.msrb.mxu2 %v1769_v16 }
  0x21   :  { %1477 = vmatmul.msk.f32.vlgmr.msrb.gmra.mxu1 %vm97_vm0, %v95_v39  ;;  %290 = vmatpush.msra.mxu3 %v1972_v61 }
  0x22   :  { %315 = vmatpush.msra.mxu1 %v1967_v60  ;;  %306 = vmatpush.msra.mxu0 %v1980_v62 }
  0x23   :  { %291 = vmatmul.f32.vlgmr.msra.gmra.mxu3 %v1651_v1  ;;  %403 = vmatpush.msrb.mxu2 %v1795_v22 }
  0x24   :  { %316 = vmatpush.msra.mxu1 %v1986_v63  ;;  %418 = vmatpush.msrb.mxu3 %v1774_v17 }
  0x25   :  { %307 = vmatpush.msra.mxu0 %v1994_v0  ;;  %404 = vmatpush.msrb.mxu2 %v1813_v26 }
  0x26   :  { %317 = vmatpush.msra.mxu1 %v2001_v3  ;;  %419 = vmatpush.msrb.mxu3 %v1790_v21 }
  0x27   :  { %308 = vmatpush.msra.mxu0 %v2006_v5  ;;  %405 = vmatpush.msrb.mxu2 %v1843_v34 }
  0x28   :  { %318 = vmatpush.msra.mxu1 %v2014_v7  ;;  %420 = vmatpush.msrb.mxu3 %v1803_v24 }
  0x29   :  { %309 = vmatpush.msra.mxu0 %v2020_v8  ;;  %1478 = vmatmul.msk.f32.gmra.mxu1 %vm97_vm0, %v96_v49  ;;  %vm394_vm0 = vcmask 1041920  }
  0x2a   :  { %421 = vmatpush.msrb.mxu3 %v1821_v28  ;;  %319 = vmatpush.msra.mxu1 %v2035_v11 }
  0x2b   :  { %310 = vmatpush.msra.mxu0 %v2029_v9  ;;  %406 = vmatpush.msrb.mxu2 %v1861_v38 }
  0x2c   :  { %311 = vmatmul.f32.vlgmr.msra.gmra.mxu0 %v1651_v1  ;;  %422 = vmatpush.msrb.mxu3 %v1853_v36 }
  0x2d   :  { %320 = vmatpush.msra.mxu1 %v2044_v12  ;;  %438 = vmatpush.msrb.mxu0 %v1967_v60 }
  0x2e   :  { %423 = vmatpush.msrb.mxu3 %v1870_v41  ;;  %407 = vmatpush.msrb.mxu2 %v1881_v43 }
  0x2f   :  { %321 = vmatpush.msra.mxu1 %v2053_v13  ;;  %439 = vmatpush.msrb.mxu0 %v1986_v63 }
  0x30   :  { %424 = vmatpush.msrb.mxu3 %v1886_v44  ;;  %408 = vmatpush.msrb.mxu2 %v1896_v46 }
  0x31   :  { %322 = vmatpush.msra.mxu1 %v2061_v14  ;;  %440 = vmatpush.msrb.mxu0 %v2001_v3 }
  0x32   :  { %425 = vmatpush.msrb.mxu3 %v1901_v47  ;;  %409 = vmatpush.msrb.mxu2 %v1911_v50 }
  0x33   :  { %323 = vmatpush.msra.mxu1 %v2070_v15  ;;  %441 = vmatpush.msrb.mxu0 %v2014_v7 }
  0x34   :  { %426 = vmatpush.msrb.mxu3 %v1922_v52  ;;  %410 = vmatpush.msrb.mxu2 %v1927_v53 }
  0x35   :  { %324 = vmatpush.msra.mxu1 %v2079_v18  ;;  %442 = vmatpush.msrb.mxu0 %v2035_v11 }
  0x36   :  { %427 = vmatpush.msrb.mxu3 %v1944_v56  ;;  %411 = vmatpush.msrb.mxu2 %v1939_v55 }
  0x37   :  { %325 = vmatpush.msra.mxu1 %v2088_v19  ;;  %443 = vmatpush.msrb.mxu0 %v2044_v12 }
  0x38   :  { %428 = vmatpush.msrb.mxu3 %v1960_v59  ;;  %412 = vmatpush.msrb.mxu2 %v1955_v58 }
  0x39   :  { %326 = vmatpush.msra.mxu1 %v2097_v20  ;;  %444 = vmatpush.msrb.mxu0 %v2053_v13 }
  0x3a   :  { %429 = vmatpush.msrb.mxu3 %v1980_v62  ;;  %413 = vmatpush.msrb.mxu2 %v1972_v61 }
  0x3b   :  { %327 = vmatpush.msra.mxu1 %v2106_v23  ;;  %445 = vmatpush.msrb.mxu0 %v2061_v14 }
  0x3c   :  { %430 = vmatpush.msrb.mxu3 %v1994_v0  ;;  %537 = vmatpush.msra.mxu2 %v1774_v17 }
  0x3d   :  { %328 = vmatpush.msra.mxu1 %v2115_v25  ;;  %446 = vmatpush.msrb.mxu0 %v2070_v15 }
  0x3e   :  { %431 = vmatpush.msrb.mxu3 %v2006_v5  ;;  %538 = vmatpush.msra.mxu2 %v1790_v21 }
  0x3f   :  { %329 = vmatpush.msra.mxu1 %v2124_v27  ;;  %447 = vmatpush.msrb.mxu0 %v2079_v18 }
  0x40   :  { %432 = vmatpush.msrb.mxu3 %v2020_v8  ;;  %539 = vmatpush.msra.mxu2 %v1803_v24 }
  0x41   :  { %330 = vmatpush.msra.mxu1 %v2133_v29  ;;  %448 = vmatpush.msrb.mxu0 %v2088_v19 }
  0x42   :  { %331 = vmatmul.f32.vlgmr.msra.gmra.mxu1 %v1651_v1  ;;  %433 = vmatpush.msrb.mxu3 %v2029_v9 }
  0x43   :  { %449 = vmatpush.msrb.mxu0 %v2097_v20  ;;  %517 = vmatpush.msrb.mxu1 %v1716_v2 }
  0x44   :  { %557 = vmatpush.msra.mxu3 %v1967_v60  ;;  %540 = vmatpush.msra.mxu2 %v1821_v28 }
  0x45   :  { %450 = vmatpush.msrb.mxu0 %v2106_v23  ;;  %518 = vmatpush.msrb.mxu1 %v1725_v4 }
  0x46   :  { %558 = vmatpush.msra.mxu3 %v1986_v63  ;;  %541 = vmatpush.msra.mxu2 %v1853_v36 }
  0x47   :  { %451 = vmatpush.msrb.mxu0 %v2115_v25  ;;  %519 = vmatpush.msrb.mxu1 %v1733_v6 }
  0x48   :  { %559 = vmatpush.msra.mxu3 %v2001_v3  ;;  %542 = vmatpush.msra.mxu2 %v1870_v41 }
  0x49   :  { %452 = vmatpush.msrb.mxu0 %v2124_v27  ;;  %520 = vmatpush.msrb.mxu1 %v1748_v10 }
  0x4a   :  { %560 = vmatpush.msra.mxu3 %v2014_v7  ;;  %543 = vmatpush.msra.mxu2 %v1886_v44 }
  0x4b   :  { %453 = vmatpush.msrb.mxu0 %v2133_v29  ;;  %521 = vmatpush.msrb.mxu1 %v1769_v16 }
  0x4c   :  { %561 = vmatpush.msra.mxu3 %v2035_v11  ;;  %544 = vmatpush.msra.mxu2 %v1901_v47 }
  0x4d   :  { %522 = vmatpush.msrb.mxu1 %v1795_v22  ;;  %636 = vmatpush.msra.mxu0 %v1716_v2 }
  0x4e   :  { %562 = vmatpush.msra.mxu3 %v2044_v12  ;;  %545 = vmatpush.msra.mxu2 %v1922_v52 }
  0x4f   :  { %523 = vmatpush.msrb.mxu1 %v1813_v26  ;;  %637 = vmatpush.msra.mxu0 %v1725_v4 }
  0x50   :  { %563 = vmatpush.msra.mxu3 %v2053_v13  ;;  %546 = vmatpush.msra.mxu2 %v1944_v56 }
  0x51   :  { %524 = vmatpush.msrb.mxu1 %v1843_v34  ;;  %638 = vmatpush.msra.mxu0 %v1733_v6 }
  0x52   :  { %564 = vmatpush.msra.mxu3 %v2061_v14  ;;  %547 = vmatpush.msra.mxu2 %v1960_v59 }
  0x53   :  { %525 = vmatpush.msrb.mxu1 %v1861_v38  ;;  %639 = vmatpush.msra.mxu0 %v1748_v10 }
  0x54   :  { %565 = vmatpush.msra.mxu3 %v2070_v15  ;;  %548 = vmatpush.msra.mxu2 %v1980_v62 }
  0x55   :  { %526 = vmatpush.msrb.mxu1 %v1881_v43  ;;  %640 = vmatpush.msra.mxu0 %v1769_v16 }
  0x56   :  { %566 = vmatpush.msra.mxu3 %v2079_v18  ;;  %549 = vmatpush.msra.mxu2 %v1994_v0 }
  0x57   :  { %527 = vmatpush.msrb.mxu1 %v1896_v46  ;;  %641 = vmatpush.msra.mxu0 %v1795_v22 }
  0x58   :  { %567 = vmatpush.msra.mxu3 %v2088_v19  ;;  %550 = vmatpush.msra.mxu2 %v2006_v5 }
  0x59   :  { %528 = vmatpush.msrb.mxu1 %v1911_v50  ;;  %642 = vmatpush.msra.mxu0 %v1813_v26 }
  0x5a   :  { %568 = vmatpush.msra.mxu3 %v2097_v20  ;;  %551 = vmatpush.msra.mxu2 %v2020_v8 }
  0x5b   :  { %529 = vmatpush.msrb.mxu1 %v1927_v53  ;;  %643 = vmatpush.msra.mxu0 %v1843_v34 }
  0x5c   :  { %569 = vmatpush.msra.mxu3 %v2106_v23  ;;  %552 = vmatpush.msra.mxu2 %v2029_v9 }
  0x5d   :  { %530 = vmatpush.msrb.mxu1 %v1939_v55  ;;  %644 = vmatpush.msra.mxu0 %v1861_v38 }
  0x5e   :  { %570 = vmatpush.msra.mxu3 %v2115_v25 }
  0x5f   :  { %531 = vmatpush.msrb.mxu1 %v1955_v58  ;;  %645 = vmatpush.msra.mxu0 %v1881_v43 }
  0x60   :  { %571 = vmatpush.msra.mxu3 %v2124_v27 }
  0x61   :  { %532 = vmatpush.msrb.mxu1 %v1972_v61  ;;  %646 = vmatpush.msra.mxu0 %v1896_v46 }
  0x62   :  { %572 = vmatpush.msra.mxu3 %v2133_v29 }
  0x63   :  { %656 = vmatpush.msra.mxu1 %v1774_v17  ;;  %647 = vmatpush.msra.mxu0 %v1911_v50 }
  0x65   :  { %657 = vmatpush.msra.mxu1 %v1790_v21  ;;  %648 = vmatpush.msra.mxu0 %v1927_v53 }
  0x67   :  { %658 = vmatpush.msra.mxu1 %v1803_v24  ;;  %649 = vmatpush.msra.mxu0 %v1939_v55 }
  0x69   :  { %659 = vmatpush.msra.mxu1 %v1821_v28  ;;  %650 = vmatpush.msra.mxu0 %v1955_v58 }
  0x6b   :  { %660 = vmatpush.msra.mxu1 %v1853_v36  ;;  %651 = vmatpush.msra.mxu0 %v1972_v61 }
  0x6d   :  { %661 = vmatpush.msra.mxu1 %v1870_v41 }
  0x6f   :  { %662 = vmatpush.msra.mxu1 %v1886_v44 }
  0x71   :  { %663 = vmatpush.msra.mxu1 %v1901_v47 }
  0x73   :  { %664 = vmatpush.msra.mxu1 %v1922_v52 }
  0x75   :  { %665 = vmatpush.msra.mxu1 %v1944_v56 }
  0x77   :  { %666 = vmatpush.msra.mxu1 %v1960_v59 }
  0x79   :  { %667 = vmatpush.msra.mxu1 %v1980_v62 }
  0x7b   :  { %668 = vmatpush.msra.mxu1 %v1994_v0 }
  0x7d   :  { %669 = vmatpush.msra.mxu1 %v2006_v5 }
  0x7f   :  { %670 = vmatpush.msra.mxu1 %v2020_v8 }
  0x81   :  { %671 = vmatpush.msra.mxu1 %v2029_v9 }
  0x8e   :  { %v119_v30 = vpop.f32.mrf.mxu1 }
  0x8f   :  { %v120_v51 = vadd.f32 %v119_v30, %v66_v40 }
  0x96   :  { %v122_v31 = vpop.f32.mrf.mxu1 }
  0x97   :  { %v165_v33 = vpop.f32.mrf.mxu2  ;;  %v123_v27 = vadd.f32 %v122_v31, %v66_v40 }
  0x98   :  { %v166_v39 = vadd.f32 %v165_v33, %v68_v35 }
  0x9a   :  { %v178_v49 = vrot.slane %v166_v39, 4 }
  0x9e   :  { %v142_v42 = vpop.f32.mrf.mxu1 }
  0x9f   :  { %v143_v45 = vadd.f32 %v142_v42, %v67_v37  ;;  %v168_v48 = vpop.f32.mrf.mxu2 }
  0xa0   :  { %v169_v57 = vadd.f32 %v168_v48, %v68_v35 }
  0xa1   :  { %v177_v54 = vrot.slane %v143_v45, 6 }
  0xa2   :  { %v180_v58 = vrot.slane %v169_v57, 4 }
  0xa3   :  { %v182_v1 = vsel %vm181_vm1, %v120_v51, %v177_v54  ;;  %v186_v9 = vsel %vm185_vm2, %v120_v51, %v177_v54  ;;  %v191_v33 = vsel %vm190_vm3, %v120_v51, %v177_v54  ;;  %v195_v32 = vsel %vm194_vm4, %v177_v54, %v120_v51 }
  0xa4   :  { %v184_v42 = vsel %vm183_vm5, %v182_v1, %v178_v49  ;;  %v188_v61 = vsel %vm187_vm6, %v186_v9, %v178_v49  ;;  %v192_v29 = vsel %vm183_vm5, %v178_v49, %v191_v33  ;;  %v196_v30 = vsel %vm187_vm6, %v178_v49, %v195_v32 }
  0xa5   :  { %v189_v39 = vrot.slane %v188_v61, 2  ;;  %v193_v45 = vrot.slane %v192_v29, 4  ;;  %v197_v8 = vrot.slane %v196_v30, 6  ;;  %217 = vst [vmem:[#allocation2] sm:$0x3f] %v184_v42 }
  0xa6   :  { %v145_v35 = vpop.f32.mrf.mxu1  ;;  %v292_v54 = vpop.f32.mrf.mxu3 }
  0xa7   :  { %218 = vst [vmem:[#allocation2 + $0x6] sm:$0x3f] %v189_v39  ;;  %v146_v48 = vadd.f32 %v145_v35, %v67_v37 }
  0xa8   :  { %219 = vst [vmem:[#allocation2 + $0xc] sm:$0x3f] %v193_v45 }
  0xa9   :  { %220 = vst [vmem:[#allocation2 + $0x12] sm:$0x3f] %v197_v8  ;;  %v179_v51 = vrot.slane %v146_v48, 6  ;;  %v312_v30 = vpop.f32.mrf.mxu0 }
  0xab   :  { %v198_v1 = vsel %vm181_vm1, %v123_v27, %v179_v51  ;;  %v200_v9 = vsel %vm185_vm2, %v123_v27, %v179_v51  ;;  %v203_v33 = vsel %vm190_vm3, %v123_v27, %v179_v51  ;;  %v206_v61 = vsel %vm194_vm4, %v179_v51, %v123_v27 }
  0xac   :  { %v199_v29 = vsel %vm183_vm5, %v198_v1, %v180_v58  ;;  %v201_v49 = vsel %vm187_vm6, %v200_v9, %v180_v58  ;;  %v204_v37 = vsel %vm183_vm5, %v180_v58, %v203_v33  ;;  %v207_v57 = vsel %vm187_vm6, %v180_v58, %v206_v61  ;;  %v274_v31 = vld [vmem:[#allocation2] sm:$0x3f] }
  0xad   :  { %v202_v8 = vrot.slane %v201_v49, 2  ;;  %v205_v40 = vrot.slane %v204_v37, 4  ;;  %v208_v32 = vrot.slane %v207_v57, 6  ;;  %221 = vst [vmem:[#allocation2 + $0x18] sm:$0x3f] %v199_v29  ;;  %v335_v42 = vadd.f32 %v292_v54, %v274_v31 }
  0xae   :  { %v356_v39 = vrot.slane %v274_v31, 2  ;;  %v2250_v29 = vld [vmem:[%s2978_s4] ss:$0 sm:$0xff] }
  0xaf   :  { %222 = vst [vmem:[#allocation2 + $0x1e] sm:$0x3f] %v202_v8  ;;  %v1481_v45 = vmul.f32 -1.442695, %v335_v42 }
  0xb0   :  { %223 = vst [vmem:[#allocation2 + $0x24] sm:$0x3f] %v205_v40  ;;  %v358_v27 = vadd.f32 %v356_v39, %v312_v30 }
  0xb1   :  { %224 = vst [vmem:[#allocation2 + $0x2a] sm:$0x3f] %v208_v32  ;;  %1500 = vpow2.f32 %v1481_v45 }
  0xb2   :  { %v1482_v35 = vmul.f32 -1.442695, %v358_v27 }
  0xb4   :  { %1502 = vpow2.f32 %v1482_v35 }
  0xb7   :  { %v1501_v48 = vpop.eup %1500 }
  0xb8   :  { %v339_v51 = vadd.f32 1.0, %v1501_v48 }
  0xba   :  { %v1503_v1 = vpop.eup %1502  ;;  %1504 = vrcp.f32 %v339_v51  ;;  %v351_v57 = vand.u32 2147483648, %v339_v51  ;;  %v349_v40 = vand.u32 2147483647, %v339_v51  ;;  %vm345_vm8 = vweird.f32 %v339_v51 }
  0xbb   :  { %v362_v58 = vadd.f32 1.0, %v1503_v1  ;;  %v383_v1 = vrot.slane %v274_v31, 4  ;;  %v3017_v31 = vld [vmem:[#allocation9_spill] sm:$0xff] }
  0xbc   :  { %v352_v45 = vor.u32 1.1754944e-38, %v351_v57  ;;  %vm350_vm10 = vcmp.eq.f32.partialorder %v349_v40, 8.507059e+37 }
  0xbd   :  { %1506 = vrcp.f32 %v362_v58  ;;  %vm368_vm12 = vweird.f32 %v362_v58 }
  0xbf   :  { %v332_v37 = vpop.f32.mrf.mxu1 }
  0xc0   :  { %v1505_v9 = vpop.eup %1504  ;;  %v381_v30 = vadd.f32 %v2250_v29, %v332_v37 }
  0xc1   :  { %v341_v33 = vmul.f32 %v1505_v9, %v339_v51  ;;  %vm346_vm7 = vweird.f32 %v1505_v9 }
  0xc2   :  { %vm347_vm9 = vmor %vm345_vm8, %vm346_vm7 }
  0xc3   :  { %v1507_v61 = vpop.eup %1506  ;;  %v342_v54 = vsub.f32 1.0, %v341_v33  ;;  %v374_v33 = vand.u32 2147483648, %v362_v58 }
  0xc4   :  { %v364_v49 = vmul.f32 %v1507_v61, %v362_v58  ;;  %vm369_vm11 = vweird.f32 %v1507_v61 }
  0xc5   :  { %v343_v8 = vmul.f32 %v1505_v9, %v342_v54  ;;  %v372_v54 = vand.u32 2147483647, %v362_v58  ;;  %vm370_vm13 = vmor %vm368_vm12, %vm369_vm11  ;;  %v397_v58 = vld [vmem:[#allocation2 + $0x6] sm:$0x3f] }
  0xc6   :  { %v365_v32 = vsub.f32 1.0, %v364_v49 }
  0xc7   :  { %v344_v42 = vadd.f32 %v1505_v9, %v343_v8  ;;  %v375_v8 = vor.u32 1.1754944e-38, %v374_v33  ;;  %vm373_vm14 = vcmp.eq.f32.partialorder %v372_v54, 8.507059e+37 }
  0xc8   :  { %v366_v39 = vmul.f32 %v1507_v61, %v365_v32 }
  0xc9   :  { %v348_v27 = vsel %vm347_vm9, %v1505_v9, %v344_v42 }
  0xca   :  { %v367_v35 = vadd.f32 %v1507_v61, %v366_v39  ;;  %v353_v48 = vsel %vm350_vm10, %v352_v45, %v348_v27 }
  0xcb   :  { %v382_v5 = vmul.f32 %v381_v30, %v353_v48 }
  0xcc   :  { %v371_v49 = vsel %vm370_vm13, %v1507_v61, %v367_v35  ;;  %v479_v61 = vrot.slane %v397_v58, 2 }
  0xcd   :  { %v385_v55 = vadd.f32 %v383_v1, %v382_v5  ;;  %v376_v51 = vsel %vm373_vm14, %v375_v8, %v371_v49  ;;  %v3016_v5 = vld [vmem:[#allocation6_spill] sm:$0xff] }
  0xce   :  { %v387_v37 = vsub.f32 1.0, %v376_v51  ;;  %v389_v9 = vmul.f32 0.0, %v376_v51 }
  0xcf   :  { %1508 = vtanh.f32 %v385_v55  ;;  %v3015_v55 = vld [vmem:[#allocation11_spill] sm:$0xff] }
  0xd5   :  { %v1509_v32 = vpop.eup %1508 }
  0xd6   :  { %v388_v57 = vmul.f32 %v1509_v32, %v387_v37 }
  0xd8   :  { %v2253_v40 = vadd.f32 %v389_v9, %v388_v57 }
  0xda   :  { %414 = vmatmul.f32.vlgmr.msrb.gmra.mxu2 %v2253_v40  ;;  %434 = vmatmul.f32.vlgmr.msrb.gmra.mxu3 %v2253_v40  ;;  %392 = vst.msk [vmem:[#allocation3] sm:$0x3] %vm391_vm15, %v2253_v40 }
  0xdb   :  { %454 = vmatmul.f32.vlgmr.msrb.gmra.mxu0 %v2253_v40  ;;  %395 = vst.msk [vmem:[#allocation3 + $0xe] sm:$0x3] %vm394_vm0, %v2253_v40  ;;  %676 = vmatpush.msrb.mxu2 %v1967_v60 }
  0xdc   :  { %755 = vmatpush.msrb.mxu3 %v1716_v2  ;;  %775 = vmatpush.msrb.mxu0 %v1774_v17  ;;  %v3010_v2 = vld [vmem:[#allocation4_spill] sm:$0xff] }
  0xdd   :  { %677 = vmatpush.msrb.mxu2 %v1986_v63 }
  0xde   :  { %756 = vmatpush.msrb.mxu3 %v1725_v4  ;;  %776 = vmatpush.msrb.mxu0 %v1790_v21  ;;  %v3011_v4 = vld [vmem:[#allocation7_spill] sm:$0xff] }
  0xdf   :  { %678 = vmatpush.msrb.mxu2 %v2001_v3 }
  0xe0   :  { %757 = vmatpush.msrb.mxu3 %v1733_v6  ;;  %777 = vmatpush.msrb.mxu0 %v1803_v24  ;;  %v3012_v6 = vld [vmem:[#allocation10_spill] sm:$0xff] }
  0xe1   :  { %679 = vmatpush.msrb.mxu2 %v2014_v7 }
  0xe2   :  { %758 = vmatpush.msrb.mxu3 %v1748_v10  ;;  %778 = vmatpush.msrb.mxu0 %v1821_v28  ;;  %v3013_v10 = vld [vmem:[#allocation5_spill] sm:$0xff] }
  0xe3   :  { %680 = vmatpush.msrb.mxu2 %v2035_v11 }
  0xe4   :  { %759 = vmatpush.msrb.mxu3 %v1769_v16  ;;  %779 = vmatpush.msrb.mxu0 %v1853_v36  ;;  %v3014_v16 = vld [vmem:[#allocation8_spill] sm:$0xff] }
  0xe5   :  { %681 = vmatpush.msrb.mxu2 %v2044_v12 }
  0xe6   :  { %760 = vmatpush.msrb.mxu3 %v1795_v22  ;;  %780 = vmatpush.msrb.mxu0 %v1870_v41 }
  0xe7   :  { %682 = vmatpush.msrb.mxu2 %v2053_v13 }
  0xe8   :  { %761 = vmatpush.msrb.mxu3 %v1813_v26  ;;  %781 = vmatpush.msrb.mxu0 %v1886_v44 }
  0xe9   :  { %683 = vmatpush.msrb.mxu2 %v2061_v14 }
  0xea   :  { %762 = vmatpush.msrb.mxu3 %v1843_v34  ;;  %782 = vmatpush.msrb.mxu0 %v1901_v47 }
  0xeb   :  { %684 = vmatpush.msrb.mxu2 %v2070_v15 }
  0xec   :  { %763 = vmatpush.msrb.mxu3 %v1861_v38  ;;  %783 = vmatpush.msrb.mxu0 %v1922_v52 }
  0xed   :  { %685 = vmatpush.msrb.mxu2 %v2079_v18 }
  0xee   :  { %764 = vmatpush.msrb.mxu3 %v1881_v43  ;;  %784 = vmatpush.msrb.mxu0 %v1944_v56 }
  0xef   :  { %686 = vmatpush.msrb.mxu2 %v2088_v19 }
  0xf0   :  { %765 = vmatpush.msrb.mxu3 %v1896_v46  ;;  %785 = vmatpush.msrb.mxu0 %v1960_v59 }
  0xf1   :  { %687 = vmatpush.msrb.mxu2 %v2097_v20 }
  0xf2   :  { %766 = vmatpush.msrb.mxu3 %v1911_v50  ;;  %786 = vmatpush.msrb.mxu0 %v1980_v62 }
  0xf3   :  { %688 = vmatpush.msrb.mxu2 %v2106_v23 }
  0xf4   :  { %767 = vmatpush.msrb.mxu3 %v1927_v53  ;;  %787 = vmatpush.msrb.mxu0 %v1994_v0 }
  0xf5   :  { %689 = vmatpush.msrb.mxu2 %v2115_v25 }
  0xf6   :  { %768 = vmatpush.msrb.mxu3 %v3010_v2  ;;  %788 = vmatpush.msrb.mxu0 %v3011_v4 }
  0xf7   :  { %690 = vmatpush.msrb.mxu2 %v3012_v6 }
  0xf8   :  { %769 = vmatpush.msrb.mxu3 %v3013_v10  ;;  %789 = vmatpush.msrb.mxu0 %v3014_v16 }
  0xf9   :  { %691 = vmatpush.msrb.mxu2 %v3015_v55 }
  0xfa   :  { %770 = vmatpush.msrb.mxu3 %v3016_v5  ;;  %790 = vmatpush.msrb.mxu0 %v3017_v31 }
 0x15d   :  { %v415_v42 = vpop.f32.mrf.mxu2  ;;  %v435_v30 = vpop.f32.mrf.mxu3 }
 0x15e   :  { %v458_v39 = vadd.f32 %v415_v42, %v397_v58  ;;  %v481_v45 = vadd.f32 %v479_v61, %v435_v30  ;;  %v455_v42 = vpop.f32.mrf.mxu0 }
 0x160   :  { %v1483_v27 = vmul.f32 -1.442695, %v458_v39  ;;  %v1484_v35 = vmul.f32 -1.442695, %v481_v45 }
 0x162   :  { %1510 = vpow2.f32 %v1483_v27  ;;  %v501_v27 = vadd.f32 %v2250_v29, %v455_v42 }
 0x163   :  { %1512 = vpow2.f32 %v1484_v35 }
 0x168   :  { %v1511_v48 = vpop.eup %1510 }
 0x169   :  { %v1513_v1 = vpop.eup %1512  ;;  %v462_v33 = vadd.f32 1.0, %v1511_v48 }
 0x16a   :  { %v485_v54 = vadd.f32 1.0, %v1513_v1 }
 0x16b   :  { %1514 = vrcp.f32 %v462_v33  ;;  %v474_v57 = vand.u32 2147483648, %v462_v33  ;;  %v472_v61 = vand.u32 2147483647, %v462_v33  ;;  %vm468_vm3 = vweird.f32 %v462_v33 }
 0x16c   :  { %1516 = vrcp.f32 %v485_v54  ;;  %v497_v55 = vand.u32 2147483648, %v485_v54  ;;  %vm491_vm7 = vweird.f32 %v485_v54 }
 0x16d   :  { %v475_v45 = vor.u32 1.1754944e-38, %v474_v57  ;;  %vm473_vm5 = vcmp.eq.f32.partialorder %v472_v61, 8.507059e+37 }
 0x171   :  { %v1515_v49 = vpop.eup %1514 }
 0x172   :  { %v1517_v8 = vpop.eup %1516  ;;  %v464_v51 = vmul.f32 %v1515_v49, %v462_v33  ;;  %vm469_vm2 = vweird.f32 %v1515_v49 }
 0x173   :  { %v487_v37 = vmul.f32 %v1517_v8, %v485_v54  ;;  %vm470_vm4 = vmor %vm468_vm3, %vm469_vm2  ;;  %vm492_vm6 = vweird.f32 %v1517_v8 }
 0x174   :  { %v465_v32 = vsub.f32 1.0, %v464_v51  ;;  %v503_v51 = vrot.slane %v397_v58, 4  ;;  %vm493_vm8 = vmor %vm491_vm7, %vm492_vm6 }
 0x175   :  { %v488_v9 = vsub.f32 1.0, %v487_v37  ;;  %v495_v37 = vand.u32 2147483647, %v485_v54 }
 0x176   :  { %v466_v31 = vmul.f32 %v1515_v49, %v465_v32 }
 0x177   :  { %v489_v30 = vmul.f32 %v1517_v8, %v488_v9  ;;  %vm496_vm9 = vcmp.eq.f32.partialorder %v495_v37, 8.507059e+37 }
 0x178   :  { %v467_v39 = vadd.f32 %v1515_v49, %v466_v31  ;;  %v498_v31 = vor.u32 1.1754944e-38, %v497_v55 }
 0x179   :  { %v490_v1 = vadd.f32 %v1517_v8, %v489_v30 }
 0x17a   :  { %v471_v35 = vsel %vm470_vm4, %v1515_v49, %v467_v39 }
 0x17b   :  { %v476_v48 = vsel %vm473_vm5, %v475_v45, %v471_v35  ;;  %v494_v16 = vsel %vm493_vm8, %v1517_v8, %v490_v1 }
 0x17c   :  { %v502_v5 = vmul.f32 %v501_v27, %v476_v48  ;;  %v499_v33 = vsel %vm496_vm9, %v498_v31, %v494_v16  ;;  %v2333_v16 = vld [vmem:[%s2976_s3 + $0x150] sm:$0xff] }
 0x17d   :  { %v507_v57 = vsub.f32 1.0, %v499_v33  ;;  %v509_v49 = vmul.f32 %v499_v33, %v2253_v40  ;;  %v2325_v40 = vld [vmem:[%s2976_s3 + $0x168] sm:$0xff] }
 0x17e   :  { %v505_v32 = vadd.f32 %v503_v51, %v502_v5 }
 0x180   :  { %1518 = vtanh.f32 %v505_v32 }
 0x186   :  { %v1519_v9 = vpop.eup %1518 }
 0x187   :  { %v508_v42 = vmul.f32 %v1519_v9, %v507_v57 }
 0x189   :  { %v2312_v61 = vadd.f32 %v509_v49, %v508_v42 }
 0x18b   :  { %533 = vmatmul.f32.vlgmr.msrb.gmra.mxu1 %v2312_v61  ;;  %553 = vmatmul.f32.vlgmr.msra.gmra.mxu2 %v2312_v61  ;;  %512 = vst.msk [vmem:[#allocation3 + $0x2] sm:$0x3] %vm391_vm15, %v2312_v61 }
 0x18c   :  { %573 = vmatmul.f32.vlgmr.msra.gmra.mxu3 %v2312_v61  ;;  %514 = vst.msk [vmem:[#allocation3 + $0xc] sm:$0x3] %vm394_vm0, %v2312_v61  ;;  %795 = vmatpush.msrb.mxu1 %v1967_v60  ;;  %v2341_v60 = vld [vmem:[%s2976_s3 + $0x138] sm:$0xff] }
 0x18d   :  { %872 = vmatpush.msra.mxu2 %v2325_v40  ;;  %892 = vmatpush.msra.mxu3 %v1774_v17  ;;  %v2349_v17 = vld [vmem:[%s2976_s3 + $0x120] sm:$0xff] }
 0x18e   :  { %796 = vmatpush.msrb.mxu1 %v1986_v63 }
 0x18f   :  { %873 = vmatpush.msra.mxu2 %v2333_v16  ;;  %893 = vmatpush.msra.mxu3 %v1790_v21  ;;  %v2357_v21 = vld [vmem:[%s2976_s3 + $0x108] sm:$0xff] }
 0x190   :  { %797 = vmatpush.msrb.mxu1 %v2001_v3 }
 0x191   :  { %874 = vmatpush.msra.mxu2 %v2341_v60  ;;  %894 = vmatpush.msra.mxu3 %v1803_v24  ;;  %v3019_v24 = vld [vmem:[#allocation11_spill] sm:$0xff] }
 0x192   :  { %798 = vmatpush.msrb.mxu1 %v2014_v7 }
 0x193   :  { %875 = vmatpush.msra.mxu2 %v2349_v17  ;;  %895 = vmatpush.msra.mxu3 %v1821_v28  ;;  %v3021_v28 = vld [vmem:[#allocation9_spill] sm:$0xff] }
 0x194   :  { %799 = vmatpush.msrb.mxu1 %v2035_v11 }
 0x195   :  { %876 = vmatpush.msra.mxu2 %v2357_v21  ;;  %896 = vmatpush.msra.mxu3 %v1853_v36 }
 0x196   :  { %800 = vmatpush.msrb.mxu1 %v2044_v12 }
 0x197   :  { %877 = vmatpush.msra.mxu2 %v1795_v22  ;;  %897 = vmatpush.msra.mxu3 %v1870_v41  ;;  %v3018_v22 = vld [vmem:[#allocation8_spill] sm:$0xff] }
 0x198   :  { %801 = vmatpush.msrb.mxu1 %v2053_v13 }
 0x199   :  { %878 = vmatpush.msra.mxu2 %v1813_v26  ;;  %898 = vmatpush.msra.mxu3 %v1886_v44  ;;  %v3020_v26 = vld [vmem:[#allocation6_spill] sm:$0xff] }
 0x19a   :  { %802 = vmatpush.msrb.mxu1 %v2061_v14 }
 0x19b   :  { %879 = vmatpush.msra.mxu2 %v1843_v34  ;;  %899 = vmatpush.msra.mxu3 %v1901_v47  ;;  %v516_v34 = vld [vmem:[#allocation2 + $0xc] sm:$0x3f] }
 0x19c   :  { %803 = vmatpush.msrb.mxu1 %v2070_v15  ;;  %v622_v27 = vrot.slane %v516_v34, 4 }
 0x19d   :  { %880 = vmatpush.msra.mxu2 %v1861_v38  ;;  %900 = vmatpush.msra.mxu3 %v1922_v52 }
 0x19e   :  { %804 = vmatpush.msrb.mxu1 %v2079_v18 }
 0x19f   :  { %881 = vmatpush.msra.mxu2 %v1881_v43  ;;  %901 = vmatpush.msra.mxu3 %v1944_v56  ;;  %v598_v43 = vrot.slane %v516_v34, 2 }
 0x1a0   :  { %805 = vmatpush.msrb.mxu1 %v2088_v19 }
 0x1a1   :  { %882 = vmatpush.msra.mxu2 %v1896_v46  ;;  %902 = vmatpush.msra.mxu3 %v1960_v59 }
 0x1a2   :  { %806 = vmatpush.msrb.mxu1 %v2097_v20 }
 0x1a3   :  { %883 = vmatpush.msra.mxu2 %v1911_v50  ;;  %903 = vmatpush.msra.mxu3 %v1980_v62 }
 0x1a4   :  { %807 = vmatpush.msrb.mxu1 %v2106_v23 }
 0x1a5   :  { %884 = vmatpush.msra.mxu2 %v1927_v53  ;;  %904 = vmatpush.msra.mxu3 %v1994_v0 }
 0x1a6   :  { %808 = vmatpush.msrb.mxu1 %v2115_v25 }
 0x1a7   :  { %885 = vmatpush.msra.mxu2 %v3010_v2  ;;  %905 = vmatpush.msra.mxu3 %v3011_v4 }
 0x1a8   :  { %809 = vmatpush.msrb.mxu1 %v3012_v6 }
 0x1a9   :  { %886 = vmatpush.msra.mxu2 %v3013_v10  ;;  %906 = vmatpush.msra.mxu3 %v3018_v22 }
 0x1aa   :  { %810 = vmatpush.msrb.mxu1 %v3019_v24 }
 0x1ab   :  { %887 = vmatpush.msra.mxu2 %v3020_v26  ;;  %907 = vmatpush.msra.mxu3 %v3021_v28 }
 0x208   :  { %v534_v36 = vpop.f32.mrf.mxu1 }
 0x209   :  { %v577_v38 = vadd.f32 %v534_v36, %v516_v34  ;;  %v2408_v34 = vld [vmem:[%s2976_s3 + $0x178] sm:$0xff] }
 0x20a   :  { %v2423_v36 = vld [vmem:[%s2976_s3 + $0x158] sm:$0xff] }
 0x20b   :  { %v1485_v41 = vmul.f32 -1.442695, %v577_v38  ;;  %v2431_v38 = vld [vmem:[%s2976_s3 + $0x140] sm:$0xff] }
 0x20d   :  { %1520 = vpow2.f32 %v1485_v41  ;;  %v2473_v41 = vld [vmem:[%s2976_s3 + $0xe0] sm:$0xff] }
 0x20e   :  { %v554_v44 = vpop.f32.mrf.mxu2 }
 0x20f   :  { %v600_v46 = vadd.f32 %v598_v43, %v554_v44  ;;  %v574_v5 = vpop.f32.mrf.mxu3  ;;  %v2486_v43 = vld [vmem:[%s2976_s3 + $0xc8] sm:$0xff]  ;;  %v2499_v44 = vld [vmem:[%s2976_s3 + $0xb0] sm:$0xff] }
 0x210   :  { %v620_v45 = vadd.f32 %v2250_v29, %v574_v5 }
 0x211   :  { %v1486_v47 = vmul.f32 -1.442695, %v600_v46  ;;  %v2512_v46 = vld [vmem:[%s2976_s3 + $0x98] sm:$0xff] }
 0x213   :  { %v1521_v50 = vpop.eup %1520  ;;  %1522 = vpow2.f32 %v1486_v47  ;;  %v2525_v47 = vld [vmem:[%s2976_s3 + $0x80] sm:$0xff] }
 0x214   :  { %v581_v52 = vadd.f32 1.0, %v1521_v50  ;;  %v2538_v50 = vld [vmem:[%s2976_s3 + $0x68] sm:$0xff] }
 0x216   :  { %1524 = vrcp.f32 %v581_v52  ;;  %v593_v2 = vand.u32 2147483648, %v581_v52  ;;  %v591_v10 = vand.u32 2147483647, %v581_v52  ;;  %vm587_vm11 = vweird.f32 %v581_v52 }
 0x218   :  { %v594_v8 = vor.u32 1.1754944e-38, %v593_v2  ;;  %vm592_vm13 = vcmp.eq.f32.partialorder %v591_v10, 8.507059e+37 }
 0x219   :  { %v1523_v53 = vpop.eup %1522 }
 0x21a   :  { %v604_v56 = vadd.f32 1.0, %v1523_v53  ;;  %v2564_v53 = vld [vmem:[%s2976_s3 + $0x38] sm:$0xff] }
 0x21c   :  { %v1525_v59 = vpop.eup %1524  ;;  %1526 = vrcp.f32 %v604_v56  ;;  %v616_v1 = vand.u32 2147483648, %v604_v56  ;;  %v614_v37 = vand.u32 2147483647, %v604_v56  ;;  %vm610_vm2 = vweird.f32 %v604_v56 }
 0x21d   :  { %v583_v62 = vmul.f32 %v1525_v59, %v581_v52  ;;  %vm588_vm10 = vweird.f32 %v1525_v59  ;;  %v2551_v52 = vld [vmem:[%s2976_s3 + $0x50] sm:$0xff] }
 0x21e   :  { %vm589_vm12 = vmor %vm587_vm11, %vm588_vm10  ;;  %v617_v33 = vor.u32 1.1754944e-38, %v616_v1  ;;  %vm615_vm4 = vcmp.eq.f32.partialorder %v614_v37, 8.507059e+37 }
 0x21f   :  { %v584_v0 = vsub.f32 1.0, %v583_v62  ;;  %v635_v62 = vld [vmem:[#allocation2 + $0x12] sm:$0x3f] }
 0x221   :  { %v585_v4 = vmul.f32 %v1525_v59, %v584_v0  ;;  %v717_v0 = vrot.slane %v635_v62, 2 }
 0x222   :  { %v1527_v55 = vpop.eup %1526 }
 0x223   :  { %v606_v58 = vmul.f32 %v1527_v55, %v604_v56  ;;  %v586_v54 = vadd.f32 %v1525_v59, %v585_v4  ;;  %vm611_vm14 = vweird.f32 %v1527_v55  ;;  %v2577_v56 = vld [vmem:[%s2976_s3 + $0x20] sm:$0xff] }
 0x224   :  { %vm612_vm3 = vmor %vm610_vm2, %vm611_vm14 }
 0x225   :  { %v607_v30 = vsub.f32 1.0, %v606_v58  ;;  %v590_v39 = vsel %vm589_vm12, %v1525_v59, %v586_v54  ;;  %v2590_v59 = vld [vmem:[%s2976_s3 + $0x8] sm:$0xff] }
 0x226   :  { %v595_v35 = vsel %vm592_vm13, %v594_v8, %v590_v39 }
 0x227   :  { %v608_v48 = vmul.f32 %v1527_v55, %v607_v30  ;;  %v621_v51 = vmul.f32 %v620_v45, %v595_v35 }
 0x229   :  { %v609_v32 = vadd.f32 %v1527_v55, %v608_v48  ;;  %v624_v31 = vadd.f32 %v622_v27, %v621_v51 }
 0x22b   :  { %v613_v57 = vsel %vm612_vm3, %v1527_v55, %v609_v32  ;;  %1528 = vtanh.f32 %v624_v31 }
 0x22c   :  { %v618_v9 = vsel %vm615_vm4, %v617_v33, %v613_v57 }
 0x22d   :  { %v626_v42 = vsub.f32 1.0, %v618_v9  ;;  %v628_v26 = vmul.f32 %v618_v9, %v2312_v61  ;;  %v2415_v61 = vld [vmem:[%s2976_s3 + $0x170] sm:$0xff] }
 0x231   :  { %v1529_v49 = vpop.eup %1528 }
 0x232   :  { %v627_v22 = vmul.f32 %v1529_v49, %v626_v42 }
 0x234   :  { %v2396_v28 = vadd.f32 %v628_v26, %v627_v22 }
 0x236   :  { %631 = vst.msk [vmem:[#allocation3 + $0x4] sm:$0x3] %vm391_vm15, %v2396_v28  ;;  %652 = vmatmul.f32.vlgmr.msra.gmra.mxu0 %v2396_v28  ;;  %672 = vmatmul.f32.vlgmr.msra.gmra.mxu1 %v2396_v28 }
 0x237   :  { %633 = vst.msk [vmem:[#allocation3 + $0xa] sm:$0x3] %vm394_vm0, %v2396_v28  ;;  %692 = vmatmul.f32.vlgmr.msrb.gmra.mxu2 %v2396_v28  ;;  %912 = vmatpush.msra.mxu0 %v2408_v34 }
 0x238   :  { %989 = vmatpush.msra.mxu1 %v2325_v40  ;;  %1009 = vmatpush.msrb.mxu2 %v2415_v61 }
 0x239   :  { %913 = vmatpush.msra.mxu0 %v1986_v63  ;;  %v2439_v63 = vld [vmem:[%s2976_s3 + $0x128] sm:$0xff] }
 0x23a   :  { %990 = vmatpush.msra.mxu1 %v2333_v16  ;;  %1010 = vmatpush.msrb.mxu2 %v2423_v36 }
 0x23b   :  { %914 = vmatpush.msra.mxu0 %v2001_v3  ;;  %v2447_v3 = vld [vmem:[%s2976_s3 + $0x110] sm:$0xff] }
 0x23c   :  { %991 = vmatpush.msra.mxu1 %v2341_v60  ;;  %1011 = vmatpush.msrb.mxu2 %v2431_v38 }
 0x23d   :  { %915 = vmatpush.msra.mxu0 %v2014_v7  ;;  %v2454_v7 = vld [vmem:[%s2976_s3 + $0xf0] sm:$0xff] }
 0x23e   :  { %992 = vmatpush.msra.mxu1 %v2349_v17  ;;  %1012 = vmatpush.msrb.mxu2 %v2439_v63 }
 0x23f   :  { %916 = vmatpush.msra.mxu0 %v2035_v11  ;;  %v2460_v11 = vld [vmem:[%s2976_s3 + $0xf8] sm:$0xff] }
 0x240   :  { %993 = vmatpush.msra.mxu1 %v2357_v21  ;;  %1013 = vmatpush.msrb.mxu2 %v2447_v3 }
 0x241   :  { %917 = vmatpush.msra.mxu0 %v2044_v12  ;;  %v2467_v12 = vld [vmem:[%s2976_s3 + $0xd8] sm:$0xff] }
 0x242   :  { %994 = vmatpush.msra.mxu1 %v2454_v7  ;;  %1014 = vmatpush.msrb.mxu2 %v2460_v11 }
 0x243   :  { %918 = vmatpush.msra.mxu0 %v2053_v13  ;;  %v2480_v13 = vld [vmem:[%s2976_s3 + $0xc0] sm:$0xff] }
 0x244   :  { %995 = vmatpush.msra.mxu1 %v2467_v12  ;;  %1015 = vmatpush.msrb.mxu2 %v2473_v41 }
 0x245   :  { %919 = vmatpush.msra.mxu0 %v2061_v14  ;;  %v2493_v14 = vld [vmem:[%s2976_s3 + $0xa8] sm:$0xff] }
 0x246   :  { %996 = vmatpush.msra.mxu1 %v2480_v13  ;;  %1016 = vmatpush.msrb.mxu2 %v2486_v43 }
 0x247   :  { %920 = vmatpush.msra.mxu0 %v2070_v15  ;;  %v2506_v15 = vld [vmem:[%s2976_s3 + $0x90] sm:$0xff] }
 0x248   :  { %997 = vmatpush.msra.mxu1 %v2493_v14  ;;  %1017 = vmatpush.msrb.mxu2 %v2499_v44 }
 0x249   :  { %921 = vmatpush.msra.mxu0 %v2079_v18  ;;  %v2519_v18 = vld [vmem:[%s2976_s3 + $0x78] sm:$0xff] }
 0x24a   :  { %998 = vmatpush.msra.mxu1 %v2506_v15  ;;  %1018 = vmatpush.msrb.mxu2 %v2512_v46 }
 0x24b   :  { %922 = vmatpush.msra.mxu0 %v2088_v19  ;;  %v2532_v19 = vld [vmem:[%s2976_s3 + $0x60] sm:$0xff] }
 0x24c   :  { %999 = vmatpush.msra.mxu1 %v2519_v18  ;;  %1019 = vmatpush.msrb.mxu2 %v2525_v47 }
 0x24d   :  { %923 = vmatpush.msra.mxu0 %v2097_v20  ;;  %v2545_v20 = vld [vmem:[%s2976_s3 + $0x48] sm:$0xff] }
 0x24e   :  { %1000 = vmatpush.msra.mxu1 %v2532_v19  ;;  %1020 = vmatpush.msrb.mxu2 %v2538_v50 }
 0x24f   :  { %924 = vmatpush.msra.mxu0 %v2106_v23  ;;  %v2558_v23 = vld [vmem:[%s2976_s3 + $0x30] sm:$0xff] }
 0x250   :  { %1001 = vmatpush.msra.mxu1 %v2545_v20  ;;  %1021 = vmatpush.msrb.mxu2 %v2551_v52 }
 0x251   :  { %925 = vmatpush.msra.mxu0 %v2115_v25  ;;  %v2571_v25 = vld [vmem:[%s2976_s3 + $0x18] sm:$0xff] }
 0x252   :  { %1002 = vmatpush.msra.mxu1 %v2558_v23  ;;  %1022 = vmatpush.msrb.mxu2 %v2564_v53 }
 0x253   :  { %926 = vmatpush.msra.mxu0 %v3012_v6  ;;  %v2584_v6 = vld [vmem:[%s2976_s3] sm:$0xff] }
 0x254   :  { %1003 = vmatpush.msra.mxu1 %v2571_v25  ;;  %1023 = vmatpush.msrb.mxu2 %v2577_v56 }
 0x255   :  { %927 = vmatpush.msra.mxu0 %v3019_v24 }
 0x256   :  { %1004 = vmatpush.msra.mxu1 %v2584_v6  ;;  %1024 = vmatpush.msrb.mxu2 %v2590_v59 }
 0x2b3   :  { %v653_v2 = vpop.f32.mrf.mxu0  ;;  %v673_v4 = vpop.f32.mrf.mxu1 }
 0x2b4   :  { %v696_v10 = vadd.f32 %v653_v2, %v635_v62  ;;  %v719_v24 = vadd.f32 %v717_v0, %v673_v4  ;;  %v741_v0 = vrot.slane %v635_v62, 4  ;;  %v2618_v62 = vld [vmem:[%s2976_s3 + $0x148] sm:$0xff] }
 0x2b6   :  { %v1487_v55 = vmul.f32 -1.442695, %v696_v10  ;;  %v1488_v5 = vmul.f32 -1.442695, %v719_v24 }
 0x2b8   :  { %1530 = vpow2.f32 %v1487_v55 }
 0x2b9   :  { %1532 = vpow2.f32 %v1488_v5 }
 0x2ba   :  { %v693_v33 = vpop.f32.mrf.mxu2 }
 0x2bb   :  { %v739_v49 = vadd.f32 %v2250_v29, %v693_v33 }
 0x2be   :  { %v1531_v58 = vpop.eup %1530 }
 0x2bf   :  { %v1533_v54 = vpop.eup %1532  ;;  %v700_v8 = vadd.f32 1.0, %v1531_v58 }
 0x2c0   :  { %v723_v30 = vadd.f32 1.0, %v1533_v54 }
 0x2c1   :  { %1534 = vrcp.f32 %v700_v8  ;;  %v712_v51 = vand.u32 2147483648, %v700_v8  ;;  %v710_v32 = vand.u32 2147483647, %v700_v8  ;;  %vm706_vm6 = vweird.f32 %v700_v8 }
 0x2c2   :  { %1536 = vrcp.f32 %v723_v30  ;;  %v735_v2 = vand.u32 2147483648, %v723_v30  ;;  %vm729_vm10 = vweird.f32 %v723_v30  ;;  %v733_v10 = vand.u32 2147483647, %v723_v30 }
 0x2c3   :  { %v713_v9 = vor.u32 1.1754944e-38, %v712_v51  ;;  %vm711_vm8 = vcmp.eq.f32.partialorder %v710_v32, 8.507059e+37 }
 0x2c4   :  { %v736_v5 = vor.u32 1.1754944e-38, %v735_v2  ;;  %vm734_vm12 = vcmp.eq.f32.partialorder %v733_v10, 8.507059e+37 }
 0x2c7   :  { %v1535_v39 = vpop.eup %1534 }
 0x2c8   :  { %v1537_v45 = vpop.eup %1536  ;;  %v702_v27 = vmul.f32 %v1535_v39, %v700_v8  ;;  %vm707_vm5 = vweird.f32 %v1535_v39 }
 0x2c9   :  { %v725_v35 = vmul.f32 %v1537_v45, %v723_v30  ;;  %vm708_vm7 = vmor %vm706_vm6, %vm707_vm5  ;;  %vm730_vm9 = vweird.f32 %v1537_v45 }
 0x2ca   :  { %v703_v48 = vsub.f32 1.0, %v702_v27  ;;  %vm731_vm11 = vmor %vm729_vm10, %vm730_vm9 }
 0x2cb   :  { %v726_v1 = vsub.f32 1.0, %v725_v35 }
 0x2cc   :  { %v704_v37 = vmul.f32 %v1535_v39, %v703_v48 }
 0x2cd   :  { %v727_v31 = vmul.f32 %v1537_v45, %v726_v1 }
 0x2ce   :  { %v705_v57 = vadd.f32 %v1535_v39, %v704_v37 }
 0x2cf   :  { %v728_v22 = vadd.f32 %v1537_v45, %v727_v31 }
 0x2d0   :  { %v709_v42 = vsel %vm708_vm7, %v1535_v39, %v705_v57 }
 0x2d1   :  { %v714_v26 = vsel %vm711_vm8, %v713_v9, %v709_v42  ;;  %v732_v55 = vsel %vm731_vm11, %v1537_v45, %v728_v22 }
 0x2d2   :  { %v740_v4 = vmul.f32 %v739_v49, %v714_v26  ;;  %v737_v58 = vsel %vm734_vm12, %v736_v5, %v732_v55 }
 0x2d3   :  { %v745_v54 = vsub.f32 1.0, %v737_v58  ;;  %v747_v27 = vmul.f32 %v737_v58, %v2396_v28  ;;  %v2610_v28 = vld [vmem:[%s2976_s3 + $0x160] sm:$0xff] }
 0x2d4   :  { %v743_v24 = vadd.f32 %v741_v0, %v740_v4 }
 0x2d6   :  { %1538 = vtanh.f32 %v743_v24 }
 0x2dc   :  { %v1539_v8 = vpop.eup %1538 }
 0x2dd   :  { %v746_v39 = vmul.f32 %v1539_v8, %v745_v54 }
 0x2df   :  { %v2595_v35 = vadd.f32 %v747_v27, %v746_v39 }
 0x2e1   :  { %750 = vst.msk [vmem:[#allocation3 + $0x6] sm:$0x3] %vm391_vm15, %v2595_v35  ;;  %771 = vmatmul.f32.vlgmr.msrb.gmra.mxu3 %v2595_v35  ;;  %791 = vmatmul.f32.vlgmr.msrb.gmra.mxu0 %v2595_v35 }
 0x2e2   :  { %752 = vst.msk [vmem:[#allocation3 + $0x8] sm:$0x3] %vm394_vm0, %v2595_v35  ;;  %811 = vmatmul.f32.vlgmr.msrb.gmra.mxu1 %v2595_v35  ;;  %1029 = vmatpush.msrb.mxu3 %v2408_v34 }
 0x2e3   :  { %1106 = vmatpush.msrb.mxu0 %v2325_v40  ;;  %1126 = vmatpush.msrb.mxu1 %v2415_v61  ;;  %v2626_v40 = vld [vmem:[%s2976_s3 + $0x130] sm:$0xff]  ;;  %v2666_v61 = vld [vmem:[%s2976_s3 + $0xb8] sm:$0xff] }
 0x2e4   :  { %1030 = vmatpush.msrb.mxu3 %v2610_v28 }
 0x2e5   :  { %1107 = vmatpush.msrb.mxu0 %v2333_v16  ;;  %1127 = vmatpush.msrb.mxu1 %v2423_v36  ;;  %v2634_v16 = vld [vmem:[%s2976_s3 + $0x118] sm:$0xff]  ;;  %v2674_v36 = vld [vmem:[%s2976_s3 + $0xa0] sm:$0xff] }
 0x2e6   :  { %1031 = vmatpush.msrb.mxu3 %v2618_v62 }
 0x2e7   :  { %1108 = vmatpush.msrb.mxu0 %v2341_v60  ;;  %1128 = vmatpush.msrb.mxu1 %v2431_v38  ;;  %v2642_v60 = vld [vmem:[%s2976_s3 + $0x100] sm:$0xff]  ;;  %v2682_v38 = vld [vmem:[%s2976_s3 + $0x88] sm:$0xff] }
 0x2e8   :  { %1032 = vmatpush.msrb.mxu3 %v2626_v40 }
 0x2e9   :  { %1109 = vmatpush.msrb.mxu0 %v2349_v17  ;;  %1129 = vmatpush.msrb.mxu1 %v2439_v63  ;;  %v2650_v17 = vld [vmem:[%s2976_s3 + $0xe8] sm:$0xff]  ;;  %v2690_v63 = vld [vmem:[%s2976_s3 + $0x70] sm:$0xff] }
 0x2ea   :  { %1033 = vmatpush.msrb.mxu3 %v2634_v16 }
 0x2eb   :  { %1110 = vmatpush.msrb.mxu0 %v2357_v21  ;;  %1130 = vmatpush.msrb.mxu1 %v2447_v3  ;;  %v2658_v21 = vld [vmem:[%s2976_s3 + $0xd0] sm:$0xff]  ;;  %v2698_v3 = vld [vmem:[%s2976_s3 + $0x58] sm:$0xff] }
 0x2ec   :  { %1034 = vmatpush.msrb.mxu3 %v2642_v60 }
 0x2ed   :  { %1111 = vmatpush.msrb.mxu0 %v2454_v7  ;;  %1131 = vmatpush.msrb.mxu1 %v2460_v11  ;;  %v2706_v7 = vld [vmem:[%s2976_s3 + $0x40] sm:$0xff]  ;;  %v2714_v11 = vld [vmem:[%s2976_s3 + $0x28] sm:$0xff] }
 0x2ee   :  { %1035 = vmatpush.msrb.mxu3 %v2650_v17 }
 0x2ef   :  { %1112 = vmatpush.msrb.mxu0 %v2467_v12  ;;  %1132 = vmatpush.msrb.mxu1 %v2473_v41  ;;  %v2722_v12 = vld [vmem:[%s2976_s3 + $0x10] sm:$0xff]  ;;  %v754_v41 = vld [vmem:[#allocation2 + $0x18] sm:$0x3f] }
 0x2f0   :  { %1036 = vmatpush.msrb.mxu3 %v2658_v21  ;;  %v860_v42 = vrot.slane %v754_v41, 4 }
 0x2f1   :  { %1113 = vmatpush.msrb.mxu0 %v2480_v13  ;;  %1133 = vmatpush.msrb.mxu1 %v2486_v43  ;;  %v836_v13 = vrot.slane %v754_v41, 2 }
 0x2f2   :  { %1037 = vmatpush.msrb.mxu3 %v2666_v61 }
 0x2f3   :  { %1114 = vmatpush.msrb.mxu0 %v2493_v14  ;;  %1134 = vmatpush.msrb.mxu1 %v2499_v44 }
 0x2f4   :  { %1038 = vmatpush.msrb.mxu3 %v2674_v36 }
 0x2f5   :  { %1115 = vmatpush.msrb.mxu0 %v2506_v15  ;;  %1135 = vmatpush.msrb.mxu1 %v2512_v46 }
 0x2f6   :  { %1039 = vmatpush.msrb.mxu3 %v2682_v38 }
 0x2f7   :  { %1116 = vmatpush.msrb.mxu0 %v2519_v18  ;;  %1136 = vmatpush.msrb.mxu1 %v2525_v47 }
 0x2f8   :  { %1040 = vmatpush.msrb.mxu3 %v2690_v63 }
 0x2f9   :  { %1117 = vmatpush.msrb.mxu0 %v2532_v19  ;;  %1137 = vmatpush.msrb.mxu1 %v2538_v50 }
 0x2fa   :  { %1041 = vmatpush.msrb.mxu3 %v2698_v3 }
 0x2fb   :  { %1118 = vmatpush.msrb.mxu0 %v2545_v20  ;;  %1138 = vmatpush.msrb.mxu1 %v2551_v52 }
 0x2fc   :  { %1042 = vmatpush.msrb.mxu3 %v2706_v7 }
 0x2fd   :  { %1119 = vmatpush.msrb.mxu0 %v2558_v23  ;;  %1139 = vmatpush.msrb.mxu1 %v2564_v53 }
 0x2fe   :  { %1043 = vmatpush.msrb.mxu3 %v2714_v11 }
 0x2ff   :  { %1120 = vmatpush.msrb.mxu0 %v2571_v25  ;;  %1140 = vmatpush.msrb.mxu1 %v2577_v56 }
 0x300   :  { %1044 = vmatpush.msrb.mxu3 %v2722_v12 }
 0x301   :  { %1121 = vmatpush.msrb.mxu0 %v2584_v6  ;;  %1141 = vmatpush.msrb.mxu1 %v2590_v59 }
 0x35e   :  { %v792_v43 = vpop.f32.mrf.mxu0 }
 0x35f   :  { %v838_v14 = vadd.f32 %v836_v13, %v792_v43  ;;  %v812_v1 = vpop.f32.mrf.mxu1 }
 0x360   :  { %v858_v32 = vadd.f32 %v2250_v29, %v812_v1 }
 0x361   :  { %v1490_v44 = vmul.f32 -1.442695, %v838_v14 }
 0x363   :  { %1540 = vpow2.f32 %v1490_v44 }
 0x364   :  { %v772_v15 = vpop.f32.mrf.mxu3 }
 0x365   :  { %v815_v46 = vadd.f32 %v772_v15, %v754_v41  ;;  %v2763_v15 = vld [vmem:[%s2978_s4] ss:$0 sm:$0xff] }
 0x367   :  { %v1489_v18 = vmul.f32 -1.442695, %v815_v46 }
 0x369   :  { %v1541_v47 = vpop.eup %1540  ;;  %1542 = vpow2.f32 %v1489_v18 }
 0x36a   :  { %v842_v19 = vadd.f32 1.0, %v1541_v47 }
 0x36c   :  { %1544 = vrcp.f32 %v842_v19  ;;  %v854_v9 = vand.u32 2147483648, %v842_v19  ;;  %vm848_vm5 = vweird.f32 %v842_v19  ;;  %v852_v22 = vand.u32 2147483647, %v842_v19 }
 0x36e   :  { %v855_v2 = vor.u32 1.1754944e-38, %v854_v9  ;;  %vm853_vm7 = vcmp.eq.f32.partialorder %v852_v22, 8.507059e+37 }
 0x36f   :  { %v1543_v50 = vpop.eup %1542 }
 0x370   :  { %v819_v20 = vadd.f32 1.0, %v1543_v50 }
 0x372   :  { %1546 = vrcp.f32 %v819_v20  ;;  %v1545_v52 = vpop.eup %1544  ;;  %v831_v59 = vand.u32 2147483648, %v819_v20  ;;  %v829_v45 = vand.u32 2147483647, %v819_v20  ;;  %vm825_vm14 = vweird.f32 %v819_v20 }
 0x373   :  { %v844_v23 = vmul.f32 %v1545_v52, %v842_v19  ;;  %vm849_vm4 = vweird.f32 %v1545_v52 }
 0x374   :  { %v832_v37 = vor.u32 1.1754944e-38, %v831_v59  ;;  %vm830_vm3 = vcmp.eq.f32.partialorder %v829_v45, 8.507059e+37  ;;  %vm850_vm6 = vmor %vm848_vm5, %vm849_vm4 }
 0x375   :  { %v845_v56 = vsub.f32 1.0, %v844_v23 }
 0x377   :  { %v846_v48 = vmul.f32 %v1545_v52, %v845_v56 }
 0x378   :  { %v1547_v53 = vpop.eup %1546 }
 0x379   :  { %v821_v25 = vmul.f32 %v1547_v53, %v819_v20  ;;  %vm826_vm13 = vweird.f32 %v1547_v53  ;;  %v847_v33 = vadd.f32 %v1545_v52, %v846_v48 }
 0x37a   :  { %vm827_vm2 = vmor %vm825_vm14, %vm826_vm13 }
 0x37b   :  { %v822_v6 = vsub.f32 1.0, %v821_v25  ;;  %v851_v0 = vsel %vm850_vm6, %v1545_v52, %v847_v33 }
 0x37c   :  { %v856_v4 = vsel %vm853_vm7, %v855_v2, %v851_v0 }
 0x37d   :  { %v823_v30 = vmul.f32 %v1547_v53, %v822_v6  ;;  %v864_v10 = vsub.f32 1.0, %v856_v4  ;;  %v866_v55 = vmul.f32 %v856_v4, %v2595_v35 }
 0x37f   :  { %v824_v51 = vadd.f32 %v1547_v53, %v823_v30 }
 0x381   :  { %v828_v31 = vsel %vm827_vm2, %v1547_v53, %v824_v51 }
 0x382   :  { %v833_v57 = vsel %vm830_vm3, %v832_v37, %v828_v31 }
 0x383   :  { %v859_v49 = vmul.f32 %v858_v32, %v833_v57  ;;  %v988_v32 = vld [vmem:[#allocation2 + $0x24] sm:$0x3f] }
 0x384   :  { %v1070_v9 = vrot.slane %v988_v32, 2 }
 0x385   :  { %v862_v26 = vadd.f32 %v860_v42, %v859_v49 }
 0x387   :  { %1548 = vtanh.f32 %v862_v26 }
 0x38d   :  { %v1549_v24 = vpop.eup %1548 }
 0x38e   :  { %v865_v29 = vmul.f32 %v1549_v24, %v864_v10 }
 0x390   :  { %v2729_v5 = vadd.f32 %v866_v55, %v865_v29 }
 0x392   :  { %868 = vst.msk [vmem:[#allocation3 + $0x8] sm:$0x3] %vm391_vm15, %v2729_v5  ;;  %888 = vmatmul.f32.vlgmr.msra.gmra.mxu2 %v2729_v5  ;;  %908 = vmatmul.f32.vlgmr.msra.gmra.mxu3 %v2729_v5 }
 0x393   :  { %869 = vst.msk [vmem:[#allocation3 + $0x6] sm:$0x3] %vm394_vm0, %v2729_v5  ;;  %928 = vmatmul.f32.vlgmr.msra.gmra.mxu0 %v2729_v5  ;;  %1146 = vmatpush.msra.mxu2 %v2408_v34  ;;  %v871_v34 = vld [vmem:[#allocation2 + $0x1e] sm:$0x3f] }
 0x394   :  { %v953_v8 = vrot.slane %v871_v34, 2  ;;  %v977_v20 = vrot.slane %v871_v34, 4 }
 0x395   :  { %1147 = vmatpush.msra.mxu2 %v2610_v28 }
 0x397   :  { %1148 = vmatpush.msra.mxu2 %v2618_v62 }
 0x399   :  { %1149 = vmatpush.msra.mxu2 %v2626_v40  ;;  %v2742_v58 = vld [vmem:[#allocation3 + $0x8] sm:$0x3] }
 0x39a   :  { %v2744_v54 = vld [vmem:[#allocation3 + $0x6] sm:$0x3]  ;;  %1266 = vst [vmem:[#allocation1 + $0x20] ss:$4 sm:$0xff] %v2742_v58 }
 0x39b   :  { %1150 = vmatpush.msra.mxu2 %v2634_v16  ;;  %1264 = vst [vmem:[#allocation1 + $0x3] ss:$4 sm:$0xff] %v2744_v54 }
 0x39d   :  { %1151 = vmatpush.msra.mxu2 %v2642_v60 }
 0x39f   :  { %1152 = vmatpush.msra.mxu2 %v2650_v17 }
 0x3a1   :  { %1153 = vmatpush.msra.mxu2 %v2658_v21 }
 0x3a3   :  { %1154 = vmatpush.msra.mxu2 %v2666_v61 }
 0x3a5   :  { %1155 = vmatpush.msra.mxu2 %v2674_v36 }
 0x3a7   :  { %1156 = vmatpush.msra.mxu2 %v2682_v38 }
 0x3a9   :  { %1157 = vmatpush.msra.mxu2 %v2690_v63 }
 0x3ab   :  { %1158 = vmatpush.msra.mxu2 %v2698_v3 }
 0x3ad   :  { %1159 = vmatpush.msra.mxu2 %v2706_v7 }
 0x3af   :  { %1160 = vmatpush.msra.mxu2 %v2714_v11 }
 0x3b1   :  { %1161 = vmatpush.msra.mxu2 %v2722_v12 }
 0x410   :  { %v929_v13 = vpop.f32.mrf.mxu0 }
 0x411   :  { %v975_v46 = vadd.f32 %v2763_v15, %v929_v13 }
 0x415   :  { %v889_v39 = vpop.f32.mrf.mxu2  ;;  %v909_v27 = vpop.f32.mrf.mxu3 }
 0x416   :  { %v932_v35 = vadd.f32 %v889_v39, %v871_v34  ;;  %v955_v28 = vadd.f32 %v953_v8, %v909_v27 }
 0x418   :  { %v1491_v62 = vmul.f32 -1.442695, %v932_v35  ;;  %v1492_v40 = vmul.f32 -1.442695, %v955_v28 }
 0x41a   :  { %1550 = vpow2.f32 %v1491_v62 }
 0x41b   :  { %1552 = vpow2.f32 %v1492_v40 }
 0x420   :  { %v1551_v16 = vpop.eup %1550 }
 0x421   :  { %v1553_v60 = vpop.eup %1552  ;;  %v936_v17 = vadd.f32 1.0, %v1551_v16 }
 0x422   :  { %v959_v21 = vadd.f32 1.0, %v1553_v60  ;;  %v1094_v60 = vrot.slane %v988_v32, 4 }
 0x423   :  { %1554 = vrcp.f32 %v936_v17  ;;  %v948_v7 = vand.u32 2147483648, %v936_v17  ;;  %v946_v41 = vand.u32 2147483647, %v936_v17  ;;  %vm942_vm9 = vweird.f32 %v936_v17 }
 0x424   :  { %1556 = vrcp.f32 %v959_v21  ;;  %v971_v52 = vand.u32 2147483648, %v959_v21  ;;  %vm965_vm13 = vweird.f32 %v959_v21  ;;  %v969_v23 = vand.u32 2147483647, %v959_v21 }
 0x425   :  { %v949_v44 = vor.u32 1.1754944e-38, %v948_v7  ;;  %vm947_vm11 = vcmp.eq.f32.partialorder %v946_v41, 8.507059e+37 }
 0x426   :  { %v972_v56 = vor.u32 1.1754944e-38, %v971_v52  ;;  %vm970_vm2 = vcmp.eq.f32.partialorder %v969_v23, 8.507059e+37 }
 0x429   :  { %v1555_v61 = vpop.eup %1554 }
 0x42a   :  { %v1557_v36 = vpop.eup %1556  ;;  %v938_v38 = vmul.f32 %v1555_v61, %v936_v17  ;;  %vm943_vm8 = vweird.f32 %v1555_v61 }
 0x42b   :  { %v961_v63 = vmul.f32 %v1557_v36, %v959_v21  ;;  %vm944_vm10 = vmor %vm942_vm9, %vm943_vm8  ;;  %vm966_vm12 = vweird.f32 %v1557_v36 }
 0x42c   :  { %v939_v3 = vsub.f32 1.0, %v938_v38  ;;  %vm967_vm14 = vmor %vm965_vm13, %vm966_vm12 }
 0x42d   :  { %v962_v11 = vsub.f32 1.0, %v961_v63 }
 0x42e   :  { %v940_v12 = vmul.f32 %v1555_v61, %v939_v3 }
 0x42f   :  { %v963_v43 = vmul.f32 %v1557_v36, %v962_v11 }
 0x430   :  { %v941_v14 = vadd.f32 %v1555_v61, %v940_v12 }
 0x431   :  { %v964_v19 = vadd.f32 %v1557_v36, %v963_v43 }
 0x432   :  { %v945_v18 = vsel %vm944_vm10, %v1555_v61, %v941_v14 }
 0x433   :  { %v950_v47 = vsel %vm947_vm11, %v949_v44, %v945_v18  ;;  %v968_v25 = vsel %vm967_vm14, %v1557_v36, %v964_v19 }
 0x434   :  { %v976_v50 = vmul.f32 %v975_v46, %v950_v47  ;;  %v973_v6 = vsel %vm970_vm2, %v972_v56, %v968_v25  ;;  %v2799_v47 = vld [vmem:[#allocation2 + $0x2a] sm:$0x3f] }
 0x435   :  { %v981_v59 = vsub.f32 1.0, %v973_v6  ;;  %v983_v48 = vmul.f32 %v973_v6, %v2729_v5  ;;  %v1187_v19 = vrot.slane %v2799_v47, 2  ;;  %v1244_v6 = vld [vmem:[%s2981_s5 + $0x70] sm:$0xff] }
 0x436   :  { %v979_v53 = vadd.f32 %v977_v20, %v976_v50 }
 0x438   :  { %1558 = vtanh.f32 %v979_v53  ;;  %v1245_v53 = vld [vmem:[%s2981_s5 + $0x78] sm:$0xff] }
 0x439   :  { %1277 = vmatpush.msra.mxu3 %v1245_v53  ;;  %v1311_v53 = vld [vmem:[%s2982_s7 + $0x48] sm:$0xff] }
 0x43b   :  { %1278 = vmatpush.msra.mxu3 %v1244_v6  ;;  %v1309_v6 = vld [vmem:[%s2982_s7 + $0x38] sm:$0xff] }
 0x43e   :  { %v1559_v30 = vpop.eup %1558 }
 0x43f   :  { %v982_v45 = vmul.f32 %v1559_v30, %v981_v59  ;;  %v1243_v59 = vld [vmem:[%s2981_s5 + $0x68] sm:$0xff]  ;;  %v1242_v30 = vld [vmem:[%s2981_s5 + $0x60] sm:$0xff] }
 0x440   :  { %1279 = vmatpush.msra.mxu3 %v1243_v59 }
 0x441   :  { %v2767_v1 = vadd.f32 %v983_v48, %v982_v45  ;;  %v1241_v45 = vld [vmem:[%s2981_s5 + $0x58] sm:$0xff] }
 0x442   :  { %1280 = vmatpush.msra.mxu3 %v1242_v30  ;;  %v1308_v30 = vld [vmem:[%s2982_s7 + $0x30] sm:$0xff] }
 0x443   :  { %985 = vst.msk [vmem:[#allocation3 + $0xa] sm:$0x3] %vm391_vm15, %v2767_v1  ;;  %1005 = vmatmul.f32.vlgmr.msra.gmra.mxu1 %v2767_v1  ;;  %1025 = vmatmul.f32.vlgmr.msrb.gmra.mxu2 %v2767_v1 }
 0x444   :  { %986 = vst.msk [vmem:[#allocation3 + $0x4] sm:$0x3] %vm394_vm0, %v2767_v1  ;;  %1045 = vmatmul.f32.vlgmr.msrb.gmra.mxu3 %v2767_v1 }
 0x445   :  { %1281 = vmatpush.msra.mxu3 %v1241_v45  ;;  %v1307_v45 = vld [vmem:[%s2982_s7 + $0x28] sm:$0xff] }
 0x44a   :  { %v2776_v51 = vld [vmem:[#allocation3 + $0xa] sm:$0x3] }
 0x44b   :  { %v2778_v37 = vld [vmem:[#allocation3 + $0x4] sm:$0x3]  ;;  %1268 = vst [vmem:[#allocation1 + $0x21] ss:$4 sm:$0xff] %v2776_v51 }
 0x44c   :  { %1262 = vst [vmem:[#allocation1 + $0x2] ss:$4 sm:$0xff] %v2778_v37 }
 0x4c0   :  { %v1006_v31 = vpop.f32.mrf.mxu1 }
 0x4c1   :  { %v1049_v33 = vadd.f32 %v1006_v31, %v988_v32 }
 0x4c3   :  { %v1493_v57 = vmul.f32 -1.442695, %v1049_v33 }
 0x4c5   :  { %1560 = vpow2.f32 %v1493_v57  ;;  %v1239_v57 = vld [vmem:[%s2981_s5 + $0x48] sm:$0xff] }
 0x4c6   :  { %v1026_v42 = vpop.f32.mrf.mxu2 }
 0x4c7   :  { %v1072_v49 = vadd.f32 %v1070_v9, %v1026_v42  ;;  %v1046_v39 = vpop.f32.mrf.mxu3  ;;  %v1238_v9 = vld [vmem:[%s2981_s5 + $0x40] sm:$0xff]  ;;  %v1237_v42 = vld [vmem:[%s2981_s5 + $0x38] sm:$0xff] }
 0x4c8   :  { %v1092_v16 = vadd.f32 %v2763_v15, %v1046_v39  ;;  %v1232_v39 = vld [vmem:[%s2981_s5 + $0x10] sm:$0xff] }
 0x4c9   :  { %v1494_v22 = vmul.f32 -1.442695, %v1072_v49  ;;  %v1236_v49 = vld [vmem:[%s2981_s5 + $0x30] sm:$0xff] }
 0x4cb   :  { %v1561_v26 = vpop.eup %1560  ;;  %1562 = vpow2.f32 %v1494_v22  ;;  %v1235_v22 = vld [vmem:[%s2981_s5 + $0x28] sm:$0xff] }
 0x4cc   :  { %v1053_v0 = vadd.f32 1.0, %v1561_v26 }
 0x4ce   :  { %1564 = vrcp.f32 %v1053_v0  ;;  %v1065_v55 = vand.u32 2147483648, %v1053_v0  ;;  %v1063_v34 = vand.u32 2147483647, %v1053_v0  ;;  %vm1059_vm4 = vweird.f32 %v1053_v0 }
 0x4d0   :  { %v1066_v28 = vor.u32 1.1754944e-38, %v1065_v55  ;;  %vm1064_vm6 = vcmp.eq.f32.partialorder %v1063_v34, 8.507059e+37 }
 0x4d1   :  { %v1563_v2 = vpop.eup %1562 }
 0x4d2   :  { %v1076_v4 = vadd.f32 1.0, %v1563_v2 }
 0x4d4   :  { %v1565_v10 = vpop.eup %1564  ;;  %1566 = vrcp.f32 %v1076_v4  ;;  %v1088_v61 = vand.u32 2147483648, %v1076_v4  ;;  %v1086_v38 = vand.u32 2147483647, %v1076_v4  ;;  %vm1082_vm8 = vweird.f32 %v1076_v4 }
 0x4d5   :  { %v1055_v24 = vmul.f32 %v1565_v10, %v1053_v0  ;;  %vm1060_vm3 = vweird.f32 %v1565_v10 }
 0x4d6   :  { %vm1061_vm5 = vmor %vm1059_vm4, %vm1060_vm3  ;;  %v1089_v7 = vor.u32 1.1754944e-38, %v1088_v61  ;;  %vm1087_vm10 = vcmp.eq.f32.partialorder %v1086_v38, 8.507059e+37 }
 0x4d7   :  { %v1056_v29 = vsub.f32 1.0, %v1055_v24 }
 0x4d9   :  { %v1057_v5 = vmul.f32 %v1565_v10, %v1056_v29  ;;  %v1233_v29 = vld [vmem:[%s2981_s5 + $0x18] sm:$0xff] }
 0x4da   :  { %v1567_v8 = vpop.eup %1566 }
 0x4db   :  { %v1078_v27 = vmul.f32 %v1567_v8, %v1076_v4  ;;  %v1058_v35 = vadd.f32 %v1565_v10, %v1057_v5  ;;  %vm1083_vm7 = vweird.f32 %v1567_v8  ;;  %v1234_v4 = vld [vmem:[%s2981_s5 + $0x20] sm:$0xff] }
 0x4dc   :  { %vm1084_vm9 = vmor %vm1082_vm8, %vm1083_vm7 }
 0x4dd   :  { %v1079_v62 = vsub.f32 1.0, %v1078_v27  ;;  %v1062_v40 = vsel %vm1061_vm5, %v1565_v10, %v1058_v35 }
 0x4de   :  { %v1067_v17 = vsel %vm1064_vm6, %v1066_v28, %v1062_v40 }
 0x4df   :  { %v1080_v21 = vmul.f32 %v1567_v8, %v1079_v62  ;;  %v1093_v36 = vmul.f32 %v1092_v16, %v1067_v17  ;;  %v1231_v62 = vld [vmem:[%s2981_s5 + $0x8] sm:$0xff]  ;;  %v1230_v17 = vld [vmem:[%s2981_s5] sm:$0xff] }
 0x4e1   :  { %v1081_v63 = vadd.f32 %v1567_v8, %v1080_v21  ;;  %v1096_v3 = vadd.f32 %v1094_v60, %v1093_v36  ;;  %v1211_v36 = vrot.slane %v2799_v47, 4 }
 0x4e3   :  { %v1085_v11 = vsel %vm1084_vm9, %v1567_v8, %v1081_v63  ;;  %1568 = vtanh.f32 %v1096_v3 }
 0x4e4   :  { %v1090_v12 = vsel %vm1087_vm10, %v1089_v7, %v1085_v11 }
 0x4e5   :  { %v1098_v41 = vsub.f32 1.0, %v1090_v12  ;;  %v1100_v14 = vmul.f32 %v1090_v12, %v2767_v1  ;;  %v1240_v1 = vld [vmem:[%s2981_s5 + $0x50] sm:$0xff] }
 0x4e6   :  { %1282 = vmatpush.msra.mxu3 %v1240_v1 }
 0x4e8   :  { %1283 = vmatpush.msra.mxu3 %v1239_v57  ;;  %v1303_v57 = vld [vmem:[%s2982_s7 + $0x8] sm:$0xff] }
 0x4e9   :  { %v1569_v13 = vpop.eup %1568 }
 0x4ea   :  { %v1099_v43 = vmul.f32 %v1569_v13, %v1098_v41  ;;  %1284 = vmatpush.msra.mxu3 %v1238_v9  ;;  %v1317_v41 = vld [vmem:[%s2982_s7 + $0x78] sm:$0xff]  ;;  %v1316_v13 = vld [vmem:[%s2982_s7 + $0x70] sm:$0xff]  ;;  %v1302_v9 = vld [vmem:[%s2982_s7] sm:$0xff] }
 0x4eb   :  { %1318 = vmatpush.msra.mxu0 %v1317_v41 }
 0x4ec   :  { %v2784_v44 = vadd.f32 %v1100_v14, %v1099_v43  ;;  %1285 = vmatpush.msra.mxu3 %v1237_v42  ;;  %v1499_v42 = vld [vmem:[%s2980_s6] ss:$0 sm:$0xff] }
 0x4ed   :  { %1319 = vmatpush.msra.mxu0 %v1316_v13 }
 0x4ee   :  { %1102 = vst.msk [vmem:[#allocation3 + $0xc] sm:$0x3] %vm391_vm15, %v2784_v44  ;;  %1122 = vmatmul.f32.vlgmr.msrb.gmra.mxu0 %v2784_v44  ;;  %1142 = vmatmul.f32.vlgmr.msrb.gmra.mxu1 %v2784_v44 }
 0x4ef   :  { %1103 = vst.msk [vmem:[#allocation3 + $0x2] sm:$0x3] %vm394_vm0, %v2784_v44  ;;  %1162 = vmatmul.f32.vlgmr.msra.gmra.mxu2 %v2784_v44  ;;  %1286 = vmatpush.msra.mxu3 %v1236_v49 }
 0x4f1   :  { %1287 = vmatpush.msra.mxu3 %v1235_v22 }
 0x4f3   :  { %1288 = vmatpush.msra.mxu3 %v1234_v4 }
 0x4f5   :  { %v2793_v46 = vld [vmem:[#allocation3 + $0xc] sm:$0x3]  ;;  %1289 = vmatpush.msra.mxu3 %v1233_v29 }
 0x4f6   :  { %v2795_v18 = vld [vmem:[#allocation3 + $0x2] sm:$0x3]  ;;  %1270 = vst [vmem:[#allocation1 + $0x22] ss:$4 sm:$0xff] %v2793_v46 }
 0x4f7   :  { %1260 = vst [vmem:[#allocation1 + $0x1] ss:$4 sm:$0xff] %v2795_v18  ;;  %1290 = vmatpush.msra.mxu3 %v1232_v39 }
 0x4f9   :  { %1291 = vmatpush.msra.mxu3 %v1231_v62 }
 0x4fb   :  { %1292 = vmatpush.msra.mxu3 %v1230_v17 }
 0x56b   :  { %v1123_v50 = vpop.f32.mrf.mxu0  ;;  %v1143_v20 = vpop.f32.mrf.mxu1 }
 0x56c   :  { %v1166_v52 = vadd.f32 %v1123_v50, %v2799_v47  ;;  %v1189_v23 = vadd.f32 %v1187_v19, %v1143_v20  ;;  %v1315_v47 = vld [vmem:[%s2982_s7 + $0x68] sm:$0xff]  ;;  %v1314_v20 = vld [vmem:[%s2982_s7 + $0x60] sm:$0xff] }
 0x56d   :  { %1320 = vmatpush.msra.mxu0 %v1315_v47 }
 0x56e   :  { %v1495_v25 = vmul.f32 -1.442695, %v1166_v52  ;;  %v1496_v56 = vmul.f32 -1.442695, %v1189_v23  ;;  %v1313_v23 = vld [vmem:[%s2982_s7 + $0x58] sm:$0xff] }
 0x56f   :  { %1321 = vmatpush.msra.mxu0 %v1314_v20 }
 0x570   :  { %1570 = vpow2.f32 %v1495_v25  ;;  %v1310_v25 = vld [vmem:[%s2982_s7 + $0x40] sm:$0xff] }
 0x571   :  { %1572 = vpow2.f32 %v1496_v56  ;;  %1322 = vmatpush.msra.mxu0 %v1313_v23 }
 0x572   :  { %v1163_v35 = vpop.f32.mrf.mxu2 }
 0x573   :  { %v1209_v60 = vadd.f32 %v2763_v15, %v1163_v35 }
 0x576   :  { %v1571_v48 = vpop.eup %1570 }
 0x577   :  { %v1573_v32 = vpop.eup %1572  ;;  %v1170_v31 = vadd.f32 1.0, %v1571_v48 }
 0x578   :  { %v1193_v33 = vadd.f32 1.0, %v1573_v32  ;;  %v1306_v32 = vld [vmem:[%s2982_s7 + $0x20] sm:$0xff] }
 0x579   :  { %1574 = vrcp.f32 %v1170_v31  ;;  %v1182_v5 = vand.u32 2147483648, %v1170_v31  ;;  %v1180_v8 = vand.u32 2147483647, %v1170_v31  ;;  %vm1176_vm12 = vweird.f32 %v1170_v31 }
 0x57a   :  { %1576 = vrcp.f32 %v1193_v33  ;;  %v1205_v38 = vand.u32 2147483648, %v1193_v33  ;;  %vm1199_vm3 = vweird.f32 %v1193_v33  ;;  %v1203_v3 = vand.u32 2147483647, %v1193_v33 }
 0x57b   :  { %v1183_v40 = vor.u32 1.1754944e-38, %v1182_v5  ;;  %vm1181_vm14 = vcmp.eq.f32.partialorder %v1180_v8, 8.507059e+37 }
 0x57c   :  { %v1206_v12 = vor.u32 1.1754944e-38, %v1205_v38  ;;  %vm1204_vm5 = vcmp.eq.f32.partialorder %v1203_v3, 8.507059e+37 }
 0x57f   :  { %v1575_v26 = vpop.eup %1574 }
 0x580   :  { %v1577_v0 = vpop.eup %1576  ;;  %v1172_v2 = vmul.f32 %v1575_v26, %v1170_v31  ;;  %vm1177_vm11 = vweird.f32 %v1575_v26  ;;  %v1305_v31 = vld [vmem:[%s2982_s7 + $0x18] sm:$0xff] }
 0x581   :  { %v1195_v10 = vmul.f32 %v1577_v0, %v1193_v33  ;;  %vm1178_vm13 = vmor %vm1176_vm12, %vm1177_vm11  ;;  %vm1200_vm2 = vweird.f32 %v1577_v0  ;;  %v1304_v33 = vld [vmem:[%s2982_s7 + $0x10] sm:$0xff] }
 0x582   :  { %v1173_v24 = vsub.f32 1.0, %v1172_v2  ;;  %vm1201_vm4 = vmor %vm1199_vm3, %vm1200_vm2 }
 0x583   :  { %v1196_v55 = vsub.f32 1.0, %v1195_v10 }
 0x584   :  { %v1174_v34 = vmul.f32 %v1575_v26, %v1173_v24 }
 0x585   :  { %v1197_v27 = vmul.f32 %v1577_v0, %v1196_v55 }
 0x586   :  { %v1175_v28 = vadd.f32 %v1575_v26, %v1174_v34 }
 0x587   :  { %v1198_v21 = vadd.f32 %v1577_v0, %v1197_v27 }
 0x588   :  { %v1179_v16 = vsel %vm1178_vm13, %v1575_v26, %v1175_v28 }
 0x589   :  { %v1184_v61 = vsel %vm1181_vm14, %v1183_v40, %v1179_v16  ;;  %v1202_v11 = vsel %vm1201_vm4, %v1577_v0, %v1198_v21 }
 0x58a   :  { %v1210_v63 = vmul.f32 %v1209_v60, %v1184_v61  ;;  %v1207_v15 = vsel %vm1204_vm5, %v1206_v12, %v1202_v11 }
 0x58b   :  { %v1215_v43 = vsub.f32 1.0, %v1207_v15  ;;  %v1217_v50 = vmul.f32 %v1207_v15, %v2784_v44  ;;  %v1312_v44 = vld [vmem:[%s2982_s7 + $0x50] sm:$0xff] }
 0x58c   :  { %v1213_v7 = vadd.f32 %v1211_v36, %v1210_v63  ;;  %1323 = vmatpush.msra.mxu0 %v1312_v44 }
 0x58e   :  { %1578 = vtanh.f32 %v1213_v7  ;;  %1324 = vmatpush.msra.mxu0 %v1311_v53 }
 0x590   :  { %1325 = vmatpush.msra.mxu0 %v1310_v25 }
 0x592   :  { %1326 = vmatpush.msra.mxu0 %v1309_v6 }
 0x594   :  { %v1579_v14 = vpop.eup %1578  ;;  %1327 = vmatpush.msra.mxu0 %v1308_v30 }
 0x595   :  { %v1216_v19 = vmul.f32 %v1579_v14, %v1215_v43 }
 0x596   :  { %1328 = vmatpush.msra.mxu0 %v1307_v45 }
 0x597   :  { %v1218_v52 = vadd.f32 %v1217_v50, %v1216_v19 }
 0x598   :  { %1329 = vmatpush.msra.mxu0 %v1306_v32 }
 0x599   :  { %1219 = vst.msk [vmem:[#allocation3 + $0xe] sm:$0x3] %vm391_vm15, %v1218_v52 }
 0x59a   :  { %1220 = vst.msk [vmem:[#allocation3] sm:$0x3] %vm394_vm0, %v1218_v52  ;;  %1330 = vmatpush.msra.mxu0 %v1305_v31 }
 0x59b   :  { %1221 = vst [vmem:[%s2983_s9] sm:$0x3] %v1218_v52 }
 0x59c   :  { %1331 = vmatpush.msra.mxu0 %v1304_v33 }
 0x59e   :  { %1332 = vmatpush.msra.mxu0 %v1303_v57 }
 0x5a0   :  { %v2883_v56 = vld [vmem:[#allocation3 + $0xe] sm:$0x3]  ;;  %1333 = vmatpush.msra.mxu0 %v1302_v9 }
 0x5a1   :  { %v2888_v59 = vld [vmem:[#allocation3] sm:$0x3]  ;;  %1272 = vst [vmem:[#allocation1 + $0x23] ss:$4 sm:$0xff] %v2883_v56 }
 0x5a2   :  { %1258 = vst [vmem:[#allocation1] ss:$4 sm:$0xff] %v2888_v59 }
 0x5a8   :  { %v1274_v1 = vld.sshfl [vmem:[#allocation1 + $0x20] sm:$0xff pattern:$0x73625140] }
 0x5a9   :  { %v1273_v48 = vld.sshfl [vmem:[#allocation1] sm:$0xff pattern:$0x73625140] }
 0x5aa   :  { %1293 = vmatmul.f32.vlgmr.msra.gmra.mxu3 %v1273_v48 }
 0x5b2   :  { %1296 = vmatmul.f32.gmra.mxu3 %v1274_v1 }
 0x62d   :  { %v1294_v49 = vpop.f32.mrf.mxu3 }
 0x62e   :  { %v1295_v22 = vadd.f32 %v1499_v42, %v1294_v49 }
 0x630   :  { %1580 = vtanh.f32 %v1295_v22 }
 0x635   :  { %v1297_v26 = vpop.f32.mrf.mxu3 }
 0x636   :  { %v1581_v0 = vpop.eup %1580  ;;  %v1298_v2 = vadd.f32 %v1499_v42, %v1297_v26 }
 0x637   :  { %1334 = vmatmul.f32.vlgmr.msra.gmra.mxu0 %v1581_v0 }
 0x638   :  { %1582 = vtanh.f32 %v1298_v2 }
 0x63e   :  { %v1583_v4 = vpop.eup %1582 }
 0x63f   :  { %1337 = vmatmul.f32.gmra.mxu0 %v1583_v4 }
 0x6b4   :  { %v1335_v10 = vpop.f32.mrf.mxu0 }
 0x6b5   :  { %v1343_v24 = vrot.slane %v1335_v10, 2  ;;  %v1344_v29 = vrot.slane %v1335_v10, 4  ;;  %v1345_v55 = vrot.slane %v1335_v10, 6  ;;  %v1355_v35 = vsel %vm181_vm1, %v1335_v10, -inf }
 0x6b7   :  { %v1356_v28 = vsel %vm181_vm1, %v1343_v24, -inf  ;;  %v1357_v62 = vsel %vm181_vm1, %v1344_v29, -inf  ;;  %v1358_v40 = vsel %vm181_vm1, %v1345_v55, -inf }
 0x6bc   :  { %v1338_v5 = vpop.f32.mrf.mxu0 }
 0x6bd   :  { %v1346_v34 = vrot.slane %v1338_v5, 2  ;;  %v1347_v8 = vrot.slane %v1338_v5, 4  ;;  %v1348_v39 = vrot.slane %v1338_v5, 6  ;;  %v1359_v27 = vsel %vm181_vm1, %v1338_v5, -inf }
 0x6be   :  { %v1360_v21 = vmax.f32 %v1355_v35, %v1359_v27 }
 0x6bf   :  { %v1361_v16 = vsel %vm181_vm1, %v1346_v34, -inf  ;;  %v1363_v60 = vsel %vm181_vm1, %v1347_v8, -inf  ;;  %v1365_v17 = vsel %vm181_vm1, %v1348_v39, -inf }
 0x6c0   :  { %v1362_v61 = vmax.f32 %v1356_v28, %v1361_v16  ;;  %v1364_v36 = vmax.f32 %v1357_v62, %v1363_v60  ;;  %v1366_v38 = vmax.f32 %v1358_v40, %v1365_v17 }
 0x6c2   :  { %v1367_v63 = vmax.f32 %v1360_v21, %v1362_v61  ;;  %v1368_v3 = vmax.f32 %v1364_v36, %v1366_v38 }
 0x6c4   :  { %v1369_v7 = vmax.f32 %v1367_v63, %v1368_v3 }
 0x6c6   :  { %v1370_v11 = vsub.f32 %v1335_v10, %v1369_v7  ;;  %v1371_v12 = vsub.f32 %v1343_v24, %v1369_v7  ;;  %v1372_v15 = vsub.f32 %v1344_v29, %v1369_v7  ;;  %v1373_v41 = vsub.f32 %v1345_v55, %v1369_v7 }
 0x6c7   :  { %v1374_v13 = vsub.f32 %v1338_v5, %v1369_v7  ;;  %v1375_v19 = vsub.f32 %v1346_v34, %v1369_v7  ;;  %v1376_v20 = vsub.f32 %v1347_v8, %v1369_v7  ;;  %v1377_v23 = vsub.f32 %v1348_v39, %v1369_v7 }
 0x6c8   :  { %v1378_v43 = vmul.f32 1.442695, %v1370_v11  ;;  %v1380_v14 = vmul.f32 1.442695, %v1371_v12  ;;  %v1382_v47 = vmul.f32 1.442695, %v1372_v15 }
 0x6c9   :  { %v1384_v50 = vmul.f32 1.442695, %v1373_v41  ;;  %v1386_v52 = vmul.f32 1.442695, %v1374_v13  ;;  %v1388_v44 = vmul.f32 1.442695, %v1375_v19 }
 0x6ca   :  { %1584 = vpow2.f32 %v1378_v43  ;;  %v1390_v53 = vmul.f32 1.442695, %v1376_v20  ;;  %v1392_v30 = vmul.f32 1.442695, %v1377_v23 }
 0x6cb   :  { %1586 = vpow2.f32 %v1380_v14 }
 0x6cc   :  { %1588 = vpow2.f32 %v1382_v47 }
 0x6cd   :  { %1590 = vpow2.f32 %v1384_v50 }
 0x6ce   :  { %1592 = vpow2.f32 %v1386_v52 }
 0x6cf   :  { %1594 = vpow2.f32 %v1388_v44 }
 0x6d0   :  { %v1585_v25 = vpop.eup %1584  ;;  %1596 = vpow2.f32 %v1390_v53 }
 0x6d1   :  { %v1587_v6 = vpop.eup %1586  ;;  %v1394_v45 = vsel %vm181_vm1, %v1585_v25, 0.0  ;;  %1598 = vpow2.f32 %v1392_v30 }
 0x6d2   :  { %v1589_v48 = vpop.eup %1588  ;;  %v1395_v1 = vsel %vm181_vm1, %v1587_v6, 0.0 }
 0x6d3   :  { %v1591_v32 = vpop.eup %1590  ;;  %v1396_v31 = vadd.f32 %v1395_v1, %v1394_v45  ;;  %v1397_v33 = vsel %vm181_vm1, %v1589_v48, 0.0 }
 0x6d4   :  { %v1593_v57 = vpop.eup %1592  ;;  %v1399_v42 = vsel %vm181_vm1, %v1591_v32, 0.0 }
 0x6d5   :  { %v1398_v9 = vadd.f32 %v1397_v33, %v1396_v31  ;;  %v1595_v49 = vpop.eup %1594  ;;  %v1401_v26 = vsel %vm181_vm1, %v1593_v57, 0.0 }
 0x6d6   :  { %v1597_v0 = vpop.eup %1596  ;;  %v1403_v4 = vsel %vm181_vm1, %v1595_v49, 0.0 }
 0x6d7   :  { %v1400_v22 = vadd.f32 %v1399_v42, %v1398_v9  ;;  %v1599_v10 = vpop.eup %1598  ;;  %v1405_v29 = vsel %vm181_vm1, %v1597_v0, 0.0 }
 0x6d8   :  { %v1407_v5 = vsel %vm181_vm1, %v1599_v10, 0.0 }
 0x6d9   :  { %v1402_v2 = vadd.f32 %v1401_v26, %v1400_v22 }
 0x6db   :  { %v1404_v24 = vadd.f32 %v1403_v4, %v1402_v2 }
 0x6dd   :  { %v1406_v55 = vadd.f32 %v1405_v29, %v1404_v24 }
 0x6df   :  { %v1408_v34 = vadd.f32 %v1407_v5, %v1406_v55 }
 0x6e1   :  { %1600 = vrcp.f32 %v1408_v34  ;;  %v1420_v35 = vand.u32 2147483648, %v1408_v34  ;;  %v1418_v62 = vand.u32 2147483647, %v1408_v34  ;;  %vm1414_vm0 = vweird.f32 %v1408_v34 }
 0x6e3   :  { %v1421_v16 = vor.u32 1.1754944e-38, %v1420_v35  ;;  %vm1419_vm7 = vcmp.eq.f32.partialorder %v1418_v62, 8.507059e+37 }
 0x6e7   :  { %v1601_v8 = vpop.eup %1600 }
 0x6e8   :  { %v1410_v39 = vmul.f32 %v1601_v8, %v1408_v34  ;;  %vm1415_vm15 = vweird.f32 %v1601_v8 }
 0x6e9   :  { %vm1416_vm6 = vmor %vm1414_vm0, %vm1415_vm15 }
 0x6ea   :  { %v1411_v27 = vsub.f32 1.0, %v1410_v39 }
 0x6ec   :  { %v1412_v28 = vmul.f32 %v1601_v8, %v1411_v27 }
 0x6ee   :  { %v1413_v40 = vadd.f32 %v1601_v8, %v1412_v28 }
 0x6f0   :  { %v1417_v60 = vsel %vm1416_vm6, %v1601_v8, %v1413_v40 }
 0x6f1   :  { %v1422_v17 = vsel %vm1419_vm7, %v1421_v16, %v1417_v60 }
 0x6f2   :  { %v1423_v21 = vmul.f32 %v1585_v25, %v1422_v17  ;;  %v1424_v61 = vmul.f32 %v1587_v6, %v1422_v17  ;;  %v1425_v36 = vmul.f32 %v1589_v48, %v1422_v17  ;;  %v1426_v38 = vmul.f32 %v1591_v32, %v1422_v17 }
 0x6f3   :  { %v1427_v63 = vmul.f32 %v1593_v57, %v1422_v17  ;;  %v1428_v12 = vmul.f32 %v1595_v49, %v1422_v17  ;;  %v1429_v15 = vmul.f32 %v1597_v0, %v1422_v17  ;;  %v1430_v43 = vmul.f32 %v1599_v10, %v1422_v17 }
 0x6f4   :  { %1431 = vst [vmem:[%s2984_s10] sm:$0x3] %v1423_v21  ;;  %v1439_v3 = vmul.f32 %v1423_v21, %v2888_v59  ;;  %v1440_v7 = vmul.f32 %v1424_v61, %v2795_v18  ;;  %v1441_v11 = vmul.f32 %v1425_v36, %v2778_v37  ;;  %v1442_v41 = vmul.f32 %v1426_v38, %v2744_v54 }
 0x6f5   :  { %1432 = vst [vmem:[%s2984_s10 + $0x2] sm:$0x3] %v1424_v61  ;;  %v1443_v18 = vmul.f32 %v1427_v63, %v2742_v58  ;;  %v1444_v47 = vmul.f32 %v1428_v12, %v2776_v51  ;;  %v1445_v50 = vmul.f32 %v1429_v15, %v2793_v46  ;;  %v1446_v23 = vmul.f32 %v1430_v43, %v2883_v56 }
 0x6f6   :  { %1433 = vst [vmem:[%s2984_s10 + $0x4] sm:$0x3] %v1425_v36  ;;  %v1447_v13 = vsel %vm181_vm1, %v1439_v3, 0.0  ;;  %v1448_v59 = vsel %vm181_vm1, %v1440_v7, 0.0  ;;  %v1450_v14 = vsel %vm181_vm1, %v1441_v11, 0.0  ;;  %v1452_v19 = vsel %vm181_vm1, %v1442_v41, 0.0 }
 0x6f7   :  { %1434 = vst [vmem:[%s2984_s10 + $0x6] sm:$0x3] %v1426_v38  ;;  %v1449_v37 = vadd.f32 %v1448_v59, %v1447_v13  ;;  %v1454_v20 = vsel %vm181_vm1, %v1443_v18, 0.0  ;;  %v1456_v44 = vsel %vm181_vm1, %v1444_v47, 0.0  ;;  %v1458_v25 = vsel %vm181_vm1, %v1445_v50, 0.0 }
 0x6f8   :  { %1435 = vst [vmem:[%s2984_s10 + $0x8] sm:$0x3] %v1427_v63  ;;  %v1460_v6 = vsel %vm181_vm1, %v1446_v23, 0.0 }
 0x6f9   :  { %1436 = vst [vmem:[%s2984_s10 + $0xa] sm:$0x3] %v1428_v12  ;;  %v1451_v54 = vadd.f32 %v1450_v14, %v1449_v37 }
 0x6fa   :  { %1437 = vst [vmem:[%s2984_s10 + $0xc] sm:$0x3] %v1429_v15 }
 0x6fb   :  { %1438 = vst [vmem:[%s2984_s10 + $0xe] sm:$0x3] %v1430_v43  ;;  %v1453_v58 = vadd.f32 %v1452_v19, %v1451_v54 }
 0x6fd   :  { %v1455_v52 = vadd.f32 %v1454_v20, %v1453_v58 }
 0x6ff   :  { %v1457_v53 = vadd.f32 %v1456_v44, %v1455_v52 }
 0x701   :  { %v1459_v51 = vadd.f32 %v1458_v25, %v1457_v53 }
 0x703   :  { %v1461_v30 = vadd.f32 %v1460_v6, %v1459_v51 }
 0x705   :  { %1462 = vst [vmem:[%s2985_s8] sm:$0x3] %v1461_v30 }

</bundles_post_ra>
